<compile_context>
chip_gen: v5e
topology: v5e:2x2
jax: 0.10.0
libtpu: 0.0.40
codegen_flags: <defaults>
</compile_context>

<pallas_src>
import functools

import jax
import jax.numpy as jnp
from jax import lax
from jax.experimental import pallas as pl
from jax.experimental.pallas import tpu as pltpu

EPS = 1e-5


# --------------------------- wrapper-side constants --------------------------
def _group_matrix_scaled(C, groups, HW):
    """(C, C) block-diagonal matrix, pre-scaled by 1/(HW * channels_per_group).

    Row c of (A @ stats) is then directly the per-group mean for channel c.
    """
    cg = C // groups
    idx = jnp.arange(C, dtype=jnp.int32) // cg
    a = (idx[:, None] == idx[None, :]).astype(jnp.float32)
    return a * (1.0 / float(HW * cg))


def _im2col_masks(H, W):
    """(9, 1, H*W) f32 {0,1} masks for the 3x3 taps (zero at image borders)."""
    HW = H * W
    pos = jnp.arange(HW, dtype=jnp.int32)
    row = pos // W
    col = pos - row * W
    ms = []
    for dh in (-1, 0, 1):
        for dw in (-1, 0, 1):
            m = ((row + dh >= 0) & (row + dh < H) &
                 (col + dw >= 0) & (col + dw < W))
            ms.append(m.astype(jnp.float32))
    return jnp.stack(ms, axis=0).reshape(9, 1, HW)


def _pick_image_batch(n, max_b=8):
    """Largest B <= max_b dividing n, preferring >= 2 grid steps (v7x 2 TCs)."""
    cands = [b for b in range(1, min(n, max_b) + 1) if n % b == 0]
    two_step = [b for b in cands if n // b >= 2]
    return max(two_step) if two_step else max(cands)


# --------------------------------- kernel ------------------------------------
def bottleneck_kernel(mask_ref, aw_ref, ao_ref,
                      x_ref, w1_ref, g1_ref, b1_ref,
                      w2_ref, g2_ref, b2_ref,
                      w3_ref, g3_ref, b3_ref,
                      o_ref, *, H, W, n_batch):
    """One grid step = `n_batch` images, each processed as a (C, H*W) tile."""
    HW = H * W

    # Constants / weights loaded once per grid step, shared by all images.
    masks = mask_ref[...]                    # (9, 1, HW) f32 {0,1}
    a_w = aw_ref[...]                        # (width, width) f32, 1/n folded in
    a_o = ao_ref[...]                        # (Cout,  Cout)  f32, 1/n folded in
    w1 = w1_ref[...]                         # (width, Cin)      bf16
    w2 = w2_ref[...]                         # (width, 9*width)  bf16
    w3 = w3_ref[...]                         # (Cout,  width)    bf16
    g1 = g1_ref[...]; b1 = b1_ref[...]       # (width, 1) f32
    g2 = g2_ref[...]; b2 = b2_ref[...]       # (width, 1) f32
    g3 = g3_ref[...]; b3 = b3_ref[...]       # (Cout, 1)  f32

    offsets = tuple(dh * W + dw for dh in (-1, 0, 1) for dw in (-1, 0, 1))

    def gn_scale_bias(h, a_scaled, gamma, beta):
        """GroupNorm folded into per-channel scale/bias for a (C, HW) tile."""
        s = jnp.sum(h, axis=1, keepdims=True)            # (C, 1) lane reduce
        ss = jnp.sum(h * h, axis=1, keepdims=True)       # (C, 1)
        st = jnp.dot(a_scaled, jnp.concatenate([s, ss], axis=1),
                     preferred_element_type=jnp.float32)  # (C, 2) one tiny matmul
        mean = st[:, 0:1]
        var = jnp.maximum(st[:, 1:2] - mean * mean, 0.0)  # guard cancellation
        scale = gamma * lax.rsqrt(var + EPS)
        bias = beta - mean * scale
        return scale, bias

    @pl.loop(0, n_batch)
    def _per_image(b):
        x = x_ref[b]                                      # (Cin, HW) f32

        # ---- conv1x1 (Cin -> width) + GroupNorm + ReLU ----
        h = jnp.dot(w1, x.astype(jnp.bfloat16),
                    preferred_element_type=jnp.float32)   # (width, HW)
        sc, bi = gn_scale_bias(h, a_w, g1, b1)
        h = jnp.maximum(h * sc + bi, 0.0)

        # ---- conv3x3 (stride=1, pad=1): im2col via lane rolls, K=9*width ----
        taps = []
        for k, off in enumerate(offsets):
            t = h if off == 0 else pltpu.roll(h, (-off) % HW, 1)
            taps.append((t * masks[k]).astype(jnp.bfloat16))
        t_im2col = jnp.concatenate(taps, axis=0)          # (9*width, HW) bf16
        h = jnp.dot(w2, t_im2col,
                    preferred_element_type=jnp.float32)   # (width, HW)
        sc, bi = gn_scale_bias(h, a_w, g2, b2)
        h = jnp.maximum(h * sc + bi, 0.0)

        # ---- conv1x1 (width -> Cout) + GroupNorm ----
        h = jnp.dot(w3, h.astype(jnp.bfloat16),
                    preferred_element_type=jnp.float32)   # (Cout, HW)
        sc, bi = gn_scale_bias(h, a_o, g3, b3)
        h = h * sc + bi

        # ---- identity residual + last activation (relu), lane-dense store ----
        o_ref[b] = jnp.maximum(h + x_ref[b], 0.0).astype(o_ref.dtype)


# -------------------------------- wrapper ------------------------------------
def bottleneck_forward(x_nchw, params, *, groups1, groups3, images_per_step=None):
    """x_nchw: (N, Cin, H, W) float32. Returns (N, Cout, H, W)."""
    w1, g1, b1, w2, g2, b2, w3, g3, b3 = params
    N, Cin, H, W = x_nchw.shape
    width = w1.shape[0]
    Cout = w3.shape[0]
    HW = H * W
    assert Cin == Cout, "identity residual requires Cin == Cout (downsample=None)"
    assert width % groups1 == 0 and Cout % groups3 == 0
    assert HW % 128 == 0, "lane-dense layout wants H*W to be a multiple of 128"

    B = images_per_step or _pick_image_batch(N)
    assert N % B == 0
    grid_n = N // B

    x_flat = x_nchw.reshape(N, Cin, HW)                   # free reshape (NCHW)

    # Hoisted constants: pre-scaled group matrices + 3x3 boundary masks.
    a_w = _group_matrix_scaled(width, groups1, HW)
    a_o = _group_matrix_scaled(Cout, groups3, HW)
    masks = _im2col_masks(H, W)

    # Pre-cast matmul operands to bf16 once (MXU native); GN params stay f32.
    w1_bf = w1.astype(jnp.bfloat16)                                    # (width, Cin)
    w2_bf = jnp.transpose(w2, (3, 0, 1, 2)).reshape(width, 9 * width)  # HWIO -> (O, 9I)
    w2_bf = w2_bf.astype(jnp.bfloat16)
    w3_bf = w3.astype(jnp.bfloat16)                                    # (Cout, width)

    kern = functools.partial(bottleneck_kernel, H=H, W=W, n_batch=B)

    out_flat = pl.pallas_call(
        kern,
        out_shape=jax.ShapeDtypeStruct((N, Cout, HW), jnp.float32),
        grid=(grid_n,),
        in_specs=[
            pl.BlockSpec((9, 1, HW), lambda n: (0, 0, 0)),          # masks
            pl.BlockSpec((width, width), lambda n: (0, 0)),         # A_w (scaled)
            pl.BlockSpec((Cout, Cout), lambda n: (0, 0)),           # A_o (scaled)
            pl.BlockSpec((B, Cin, HW), lambda n: (n, 0, 0)),        # x  (B images)
            pl.BlockSpec((width, Cin), lambda n: (0, 0)),           # w1
            pl.BlockSpec((width, 1), lambda n: (0, 0)),             # g1
            pl.BlockSpec((width, 1), lambda n: (0, 0)),             # b1
            pl.BlockSpec((width, 9 * width), lambda n: (0, 0)),     # w2 (im2col)
            pl.BlockSpec((width, 1), lambda n: (0, 0)),             # g2
            pl.BlockSpec((width, 1), lambda n: (0, 0)),             # b2
            pl.BlockSpec((Cout, width), lambda n: (0, 0)),          # w3
            pl.BlockSpec((Cout, 1), lambda n: (0, 0)),              # g3
            pl.BlockSpec((Cout, 1), lambda n: (0, 0)),              # b3
        ],
        out_specs=pl.BlockSpec((B, Cout, HW), lambda n: (n, 0, 0)),
        compiler_params=pltpu.CompilerParams(
            dimension_semantics=("parallel",)),
    )(masks, a_w, a_o, x_flat, w1_bf, g1, b1, w2_bf, g2, b2, w3_bf, g3, b3)

    return out_flat.reshape(N, Cout, H, W)


# ------------------------- pure-JAX reference -------------------------------
def _gn_ref(x, gamma, beta, groups):
    N, C, H, W = x.shape
    xg = x.reshape(N, groups, C // groups, H, W)
    mu = xg.mean(axis=(2, 3, 4), keepdims=True)
    var = ((xg - mu) ** 2).mean(axis=(2, 3, 4), keepdims=True)
    xn = ((xg - mu) / jnp.sqrt(var + EPS)).reshape(N, C, H, W)
    return xn * gamma.reshape(1, C, 1, 1) + beta.reshape(1, C, 1, 1)


def _conv_ref(x, w_hwio, padding):
    # Mirror the kernel's MXU numerics: bf16 operands, f32 accumulation.
    return lax.conv_general_dilated(
        x.astype(jnp.bfloat16), w_hwio.astype(jnp.bfloat16),
        window_strides=(1, 1), padding=padding,
        dimension_numbers=("NCHW", "HWIO", "NCHW"),
        preferred_element_type=jnp.float32)


def bottleneck_ref(x, params, *, groups1, groups3):
    w1, g1, b1, w2, g2, b2, w3, g3, b3 = params
    Cin = x.shape[1]
    width = w1.shape[0]
    Cout = w3.shape[0]
    h = _conv_ref(x, w1.T.reshape(1, 1, Cin, width), "VALID")
    h = jax.nn.relu(_gn_ref(h, g1[:, 0], b1[:, 0], groups1))
    h = _conv_ref(h, w2, ((1, 1), (1, 1)))
    h = jax.nn.relu(_gn_ref(h, g2[:, 0], b2[:, 0], groups1))
    h = _conv_ref(h, w3.T.reshape(1, 1, width, Cout), "VALID")
    h = _gn_ref(h, g3[:, 0], b3[:, 0], groups3)
    return jax.nn.relu(h + x)


# ------------------------------- main ----------------------------------------
if __name__ == "__main__":
    # Bottleneck(inplanes=32, planes=8): width=8, out_channels=planes*4=32,
    # stride=1, downsample=None -> identity residual is valid.
    N, H, W = 8, 16, 16            # N=8 -> B=4 images/step, 2 grid steps
    planes = 8
    inplanes = planes * 4          # 32
    width = planes                 # base_width=64, groups=1 -> width = planes
    cout = planes * 4              # 32
    groups1 = min(32, width // 4)  # 2
    groups3 = min(32, cout // 4)   # 8

    key = jax.random.PRNGKey(0)
    ks = jax.random.split(key, 10)
    x = jax.random.normal(ks[0], (N, inplanes, H, W), jnp.float32)

    w1 = 0.10 * jax.random.normal(ks[1], (width, inplanes), jnp.float32)     # conv1 (O, I)
    g1 = 1.0 + 0.1 * jax.random.normal(ks[2], (width, 1), jnp.float32)
    b1 = 0.1 * jax.random.normal(ks[3], (width, 1), jnp.float32)
    w2 = 0.05 * jax.random.normal(ks[4], (3, 3, width, width), jnp.float32)  # conv2 (HWIO)
    g2 = 1.0 + 0.1 * jax.random.normal(ks[5], (width, 1), jnp.float32)
    b2 = 0.1 * jax.random.normal(ks[6], (width, 1), jnp.float32)
    w3 = 0.10 * jax.random.normal(ks[7], (cout, width), jnp.float32)         # conv3 (O, I)
    g3 = 1.0 + 0.1 * jax.random.normal(ks[8], (cout, 1), jnp.float32)
    b3 = 0.1 * jax.random.normal(ks[9], (cout, 1), jnp.float32)
    params = (w1, g1, b1, w2, g2, b2, w3, g3, b3)

    out = bottleneck_forward(x, params, groups1=groups1, groups3=groups3)
    out = jax.block_until_ready(out)

    ref = jax.block_until_ready(
        bottleneck_ref(x, params, groups1=groups1, groups3=groups3))

    assert out.shape == (N, cout, H, W), out.shape
    assert jnp.allclose(out, ref, rtol=1e-2, atol=1e-2), (
        float(jnp.max(jnp.abs(out - ref))))

    print("KERNEL_OK")
</pallas_src>

<mosaic_0001>
module attributes {stable_mosaic.version = 11 : i64} {
  func.func @bottleneck_kernel(%arg0: i32, %arg1: memref<9x1x256xf32, #tpu.memory_space<vmem>>, %arg2: memref<8x8xf32, #tpu.memory_space<vmem>>, %arg3: memref<32x32xf32, #tpu.memory_space<vmem>>, %arg4: memref<4x32x256xf32, #tpu.memory_space<vmem>>, %arg5: memref<8x32xbf16, #tpu.memory_space<vmem>>, %arg6: memref<8x1xf32, #tpu.memory_space<vmem>>, %arg7: memref<8x1xf32, #tpu.memory_space<vmem>>, %arg8: memref<8x72xbf16, #tpu.memory_space<vmem>>, %arg9: memref<8x1xf32, #tpu.memory_space<vmem>>, %arg10: memref<8x1xf32, #tpu.memory_space<vmem>>, %arg11: memref<32x8xbf16, #tpu.memory_space<vmem>>, %arg12: memref<32x1xf32, #tpu.memory_space<vmem>>, %arg13: memref<32x1xf32, #tpu.memory_space<vmem>>, %arg14: memref<4x32x256xf32, #tpu.memory_space<vmem>>) attributes {dimension_semantics = [#tpu.dimension_semantics<parallel>], iteration_bounds = array<i64: 2>, scalar_prefetch = 0 : i64, scratch_operands = 0 : i64, tpu.core_type = #tpu.core_type<tc>, window_params = [{pipeline_mode = #tpu.pipeline_mode<synchronous>, transform_indices = @transform_0, window_bounds = array<i64: 9, 1, 256>}, {pipeline_mode = #tpu.pipeline_mode<synchronous>, transform_indices = @transform_1, window_bounds = array<i64: 8, 8>}, {pipeline_mode = #tpu.pipeline_mode<synchronous>, transform_indices = @transform_2, window_bounds = array<i64: 32, 32>}, {transform_indices = @transform_3, window_bounds = array<i64: 4, 32, 256>}, {pipeline_mode = #tpu.pipeline_mode<synchronous>, transform_indices = @transform_4, window_bounds = array<i64: 8, 32>}, {pipeline_mode = #tpu.pipeline_mode<synchronous>, transform_indices = @transform_5, window_bounds = array<i64: 8, 1>}, {pipeline_mode = #tpu.pipeline_mode<synchronous>, transform_indices = @transform_6, window_bounds = array<i64: 8, 1>}, {pipeline_mode = #tpu.pipeline_mode<synchronous>, transform_indices = @transform_7, window_bounds = array<i64: 8, 72>}, {pipeline_mode = #tpu.pipeline_mode<synchronous>, transform_indices = @transform_8, window_bounds = array<i64: 8, 1>}, {pipeline_mode = #tpu.pipeline_mode<synchronous>, transform_indices = @transform_9, window_bounds = array<i64: 8, 1>}, {pipeline_mode = #tpu.pipeline_mode<synchronous>, transform_indices = @transform_10, window_bounds = array<i64: 32, 8>}, {pipeline_mode = #tpu.pipeline_mode<synchronous>, transform_indices = @transform_11, window_bounds = array<i64: 32, 1>}, {pipeline_mode = #tpu.pipeline_mode<synchronous>, transform_indices = @transform_12, window_bounds = array<i64: 32, 1>}, {transform_indices = @transform_13, window_bounds = array<i64: 4, 32, 256>}]} {
    %c0 = arith.constant 0 : index
    %c0_0 = arith.constant 0 : index
    %c0_1 = arith.constant 0 : index
    %0 = vector.load %arg1[%c0, %c0_0, %c0_1] : memref<9x1x256xf32, #tpu.memory_space<vmem>>, vector<9x1x256xf32>
    %c0_2 = arith.constant 0 : index
    %c0_3 = arith.constant 0 : index
    %1 = vector.load %arg2[%c0_2, %c0_3] : memref<8x8xf32, #tpu.memory_space<vmem>>, vector<8x8xf32>
    %c0_4 = arith.constant 0 : index
    %c0_5 = arith.constant 0 : index
    %2 = vector.load %arg3[%c0_4, %c0_5] : memref<32x32xf32, #tpu.memory_space<vmem>>, vector<32x32xf32>
    %c0_6 = arith.constant 0 : index
    %c0_7 = arith.constant 0 : index
    %3 = vector.load %arg5[%c0_6, %c0_7] : memref<8x32xbf16, #tpu.memory_space<vmem>>, vector<8x32xbf16>
    %c0_8 = arith.constant 0 : index
    %c0_9 = arith.constant 0 : index
    %4 = vector.load %arg8[%c0_8, %c0_9] : memref<8x72xbf16, #tpu.memory_space<vmem>>, vector<8x72xbf16>
    %c0_10 = arith.constant 0 : index
    %c0_11 = arith.constant 0 : index
    %5 = vector.load %arg11[%c0_10, %c0_11] : memref<32x8xbf16, #tpu.memory_space<vmem>>, vector<32x8xbf16>
    %c0_12 = arith.constant 0 : index
    %c0_13 = arith.constant 0 : index
    %6 = vector.load %arg6[%c0_12, %c0_13] : memref<8x1xf32, #tpu.memory_space<vmem>>, vector<8x1xf32>
    %c0_14 = arith.constant 0 : index
    %c0_15 = arith.constant 0 : index
    %7 = vector.load %arg7[%c0_14, %c0_15] : memref<8x1xf32, #tpu.memory_space<vmem>>, vector<8x1xf32>
    %c0_16 = arith.constant 0 : index
    %c0_17 = arith.constant 0 : index
    %8 = vector.load %arg9[%c0_16, %c0_17] : memref<8x1xf32, #tpu.memory_space<vmem>>, vector<8x1xf32>
    %c0_18 = arith.constant 0 : index
    %c0_19 = arith.constant 0 : index
    %9 = vector.load %arg10[%c0_18, %c0_19] : memref<8x1xf32, #tpu.memory_space<vmem>>, vector<8x1xf32>
    %c0_20 = arith.constant 0 : index
    %c0_21 = arith.constant 0 : index
    %10 = vector.load %arg12[%c0_20, %c0_21] : memref<32x1xf32, #tpu.memory_space<vmem>>, vector<32x1xf32>
    %c0_22 = arith.constant 0 : index
    %c0_23 = arith.constant 0 : index
    %11 = vector.load %arg13[%c0_22, %c0_23] : memref<32x1xf32, #tpu.memory_space<vmem>>, vector<32x1xf32>
    %c0_i32 = arith.constant 0 : i32
    %c4_i32 = arith.constant 4 : i32
    %12 = arith.addi %c0_i32, %c4_i32 : i32
    %c1_i32 = arith.constant 1 : i32
    scf.for %arg15 = %c0_i32 to %12 step %c1_i32  : i32 {
      %c1_i32_25 = arith.constant 1 : i32
      %13 = arith.muli %arg15, %c1_i32_25 : i32
      %c0_i32_26 = arith.constant 0 : i32
      %14 = arith.addi %c0_i32_26, %13 : i32
      %15 = arith.index_cast %14 : i32 to index
      %c0_27 = arith.constant 0 : index
      %c0_28 = arith.constant 0 : index
      %16 = vector.load %arg4[%15, %c0_27, %c0_28] : memref<4x32x256xf32, #tpu.memory_space<vmem>>, vector<1x32x256xf32>
      %17 = vector.shape_cast %16 : vector<1x32x256xf32> to vector<32x256xf32>
      %18 = arith.truncf %17 : vector<32x256xf32> to vector<32x256xbf16>
      %cst = arith.constant dense<0.000000e+00> : vector<8x256xf32>
      %19 = tpu.matmul %3, %18, %cst {dimension_numbers = #tpu.dot_dimension_numbers<[1], [0], [0], [1], [0, 0, 1, 1], [], []>} : vector<8x32xbf16>, vector<32x256xbf16>, vector<8x256xf32> -> vector<8x256xf32>
      %cst_29 = arith.constant dense<0.000000e+00> : vector<8xf32>
      %20 = vector.multi_reduction <add>, %19, %cst_29 [1] : vector<8x256xf32> to vector<8xf32>
      %21 = vector.shape_cast %20 : vector<8xf32> to vector<8x1xf32>
      %22 = arith.mulf %19, %19 : vector<8x256xf32>
      %cst_30 = arith.constant dense<0.000000e+00> : vector<8xf32>
      %23 = vector.multi_reduction <add>, %22, %cst_30 [1] : vector<8x256xf32> to vector<8xf32>
      %24 = vector.shape_cast %23 : vector<8xf32> to vector<8x1xf32>
      %25 = tpu.concatenate %21, %24 in 1 : vector<8x1xf32>, vector<8x1xf32> -> vector<8x2xf32>
      %cst_31 = arith.constant dense<0.000000e+00> : vector<8x2xf32>
      %26 = tpu.matmul %1, %25, %cst_31 {dimension_numbers = #tpu.dot_dimension_numbers<[1], [0], [0], [1], [0, 0, 1, 1], [], []>} : vector<8x8xf32>, vector<8x2xf32>, vector<8x2xf32> -> vector<8x2xf32>
      %27 = vector.extract_strided_slice %26 {offsets = [0, 0], sizes = [8, 1], strides = [1, 1]} : vector<8x2xf32> to vector<8x1xf32>
      %28 = vector.extract_strided_slice %26 {offsets = [0, 1], sizes = [8, 1], strides = [1, 1]} : vector<8x2xf32> to vector<8x1xf32>
      %29 = arith.mulf %27, %27 : vector<8x1xf32>
      %30 = arith.subf %28, %29 : vector<8x1xf32>
      %cst_32 = arith.constant 0.000000e+00 : f32
      %31 = vector.broadcast %cst_32 : f32 to vector<8x1xf32>
      %32 = arith.maximumf %30, %31 : vector<8x1xf32>
      %cst_33 = arith.constant 9.99999974E-6 : f32
      %33 = vector.broadcast %cst_33 : f32 to vector<8x1xf32>
      %34 = arith.addf %32, %33 : vector<8x1xf32>
      %35 = math.rsqrt %34 : vector<8x1xf32>
      %36 = arith.mulf %6, %35 : vector<8x1xf32>
      %37 = arith.mulf %27, %36 : vector<8x1xf32>
      %38 = arith.subf %7, %37 : vector<8x1xf32>
      %39 = vector.broadcast %36 : vector<8x1xf32> to vector<8x256xf32>
      %40 = arith.mulf %19, %39 : vector<8x256xf32>
      %41 = vector.broadcast %38 : vector<8x1xf32> to vector<8x256xf32>
      %42 = arith.addf %40, %41 : vector<8x256xf32>
      %cst_34 = arith.constant 0.000000e+00 : f32
      %43 = vector.broadcast %cst_34 : f32 to vector<8x256xf32>
      %44 = arith.maximumf %42, %43 : vector<8x256xf32>
      %c17_i32 = arith.constant 17 : i32
      %45 = tpu.dynamic_rotate %44 by %c17_i32 dim 1 : vector<8x256xf32>, i32 -> vector<8x256xf32>
      %46 = vector.extract_strided_slice %0 {offsets = [0, 0, 0], sizes = [1, 1, 256], strides = [1, 1, 1]} : vector<9x1x256xf32> to vector<1x1x256xf32>
      %47 = vector.shape_cast %46 : vector<1x1x256xf32> to vector<1x256xf32>
      %48 = vector.broadcast %47 : vector<1x256xf32> to vector<8x256xf32>
      %49 = arith.mulf %45, %48 : vector<8x256xf32>
      %50 = arith.truncf %49 : vector<8x256xf32> to vector<8x256xbf16>
      %c16_i32 = arith.constant 16 : i32
      %51 = tpu.dynamic_rotate %44 by %c16_i32 dim 1 : vector<8x256xf32>, i32 -> vector<8x256xf32>
      %52 = vector.extract_strided_slice %0 {offsets = [1, 0, 0], sizes = [1, 1, 256], strides = [1, 1, 1]} : vector<9x1x256xf32> to vector<1x1x256xf32>
      %53 = vector.shape_cast %52 : vector<1x1x256xf32> to vector<1x256xf32>
      %54 = vector.broadcast %53 : vector<1x256xf32> to vector<8x256xf32>
      %55 = arith.mulf %51, %54 : vector<8x256xf32>
      %56 = arith.truncf %55 : vector<8x256xf32> to vector<8x256xbf16>
      %c15_i32 = arith.constant 15 : i32
      %57 = tpu.dynamic_rotate %44 by %c15_i32 dim 1 : vector<8x256xf32>, i32 -> vector<8x256xf32>
      %58 = vector.extract_strided_slice %0 {offsets = [2, 0, 0], sizes = [1, 1, 256], strides = [1, 1, 1]} : vector<9x1x256xf32> to vector<1x1x256xf32>
      %59 = vector.shape_cast %58 : vector<1x1x256xf32> to vector<1x256xf32>
      %60 = vector.broadcast %59 : vector<1x256xf32> to vector<8x256xf32>
      %61 = arith.mulf %57, %60 : vector<8x256xf32>
      %62 = arith.truncf %61 : vector<8x256xf32> to vector<8x256xbf16>
      %c1_i32_35 = arith.constant 1 : i32
      %63 = tpu.dynamic_rotate %44 by %c1_i32_35 dim 1 : vector<8x256xf32>, i32 -> vector<8x256xf32>
      %64 = vector.extract_strided_slice %0 {offsets = [3, 0, 0], sizes = [1, 1, 256], strides = [1, 1, 1]} : vector<9x1x256xf32> to vector<1x1x256xf32>
      %65 = vector.shape_cast %64 : vector<1x1x256xf32> to vector<1x256xf32>
      %66 = vector.broadcast %65 : vector<1x256xf32> to vector<8x256xf32>
      %67 = arith.mulf %63, %66 : vector<8x256xf32>
      %68 = arith.truncf %67 : vector<8x256xf32> to vector<8x256xbf16>
      %69 = vector.extract_strided_slice %0 {offsets = [4, 0, 0], sizes = [1, 1, 256], strides = [1, 1, 1]} : vector<9x1x256xf32> to vector<1x1x256xf32>
      %70 = vector.shape_cast %69 : vector<1x1x256xf32> to vector<1x256xf32>
      %71 = vector.broadcast %70 : vector<1x256xf32> to vector<8x256xf32>
      %72 = arith.mulf %44, %71 : vector<8x256xf32>
      %73 = arith.truncf %72 : vector<8x256xf32> to vector<8x256xbf16>
      %c255_i32 = arith.constant 255 : i32
      %74 = tpu.dynamic_rotate %44 by %c255_i32 dim 1 : vector<8x256xf32>, i32 -> vector<8x256xf32>
      %75 = vector.extract_strided_slice %0 {offsets = [5, 0, 0], sizes = [1, 1, 256], strides = [1, 1, 1]} : vector<9x1x256xf32> to vector<1x1x256xf32>
      %76 = vector.shape_cast %75 : vector<1x1x256xf32> to vector<1x256xf32>
      %77 = vector.broadcast %76 : vector<1x256xf32> to vector<8x256xf32>
      %78 = arith.mulf %74, %77 : vector<8x256xf32>
      %79 = arith.truncf %78 : vector<8x256xf32> to vector<8x256xbf16>
      %c241_i32 = arith.constant 241 : i32
      %80 = tpu.dynamic_rotate %44 by %c241_i32 dim 1 : vector<8x256xf32>, i32 -> vector<8x256xf32>
      %81 = vector.extract_strided_slice %0 {offsets = [6, 0, 0], sizes = [1, 1, 256], strides = [1, 1, 1]} : vector<9x1x256xf32> to vector<1x1x256xf32>
      %82 = vector.shape_cast %81 : vector<1x1x256xf32> to vector<1x256xf32>
      %83 = vector.broadcast %82 : vector<1x256xf32> to vector<8x256xf32>
      %84 = arith.mulf %80, %83 : vector<8x256xf32>
      %85 = arith.truncf %84 : vector<8x256xf32> to vector<8x256xbf16>
      %c240_i32 = arith.constant 240 : i32
      %86 = tpu.dynamic_rotate %44 by %c240_i32 dim 1 : vector<8x256xf32>, i32 -> vector<8x256xf32>
      %87 = vector.extract_strided_slice %0 {offsets = [7, 0, 0], sizes = [1, 1, 256], strides = [1, 1, 1]} : vector<9x1x256xf32> to vector<1x1x256xf32>
      %88 = vector.shape_cast %87 : vector<1x1x256xf32> to vector<1x256xf32>
      %89 = vector.broadcast %88 : vector<1x256xf32> to vector<8x256xf32>
      %90 = arith.mulf %86, %89 : vector<8x256xf32>
      %91 = arith.truncf %90 : vector<8x256xf32> to vector<8x256xbf16>
      %c239_i32 = arith.constant 239 : i32
      %92 = tpu.dynamic_rotate %44 by %c239_i32 dim 1 : vector<8x256xf32>, i32 -> vector<8x256xf32>
      %93 = vector.extract_strided_slice %0 {offsets = [8, 0, 0], sizes = [1, 1, 256], strides = [1, 1, 1]} : vector<9x1x256xf32> to vector<1x1x256xf32>
      %94 = vector.shape_cast %93 : vector<1x1x256xf32> to vector<1x256xf32>
      %95 = vector.broadcast %94 : vector<1x256xf32> to vector<8x256xf32>
      %96 = arith.mulf %92, %95 : vector<8x256xf32>
      %97 = arith.truncf %96 : vector<8x256xf32> to vector<8x256xbf16>
      %98 = tpu.concatenate %50, %56, %62, %68, %73, %79, %85, %91, %97 in 0 : vector<8x256xbf16>, vector<8x256xbf16>, vector<8x256xbf16>, vector<8x256xbf16>, vector<8x256xbf16>, vector<8x256xbf16>, vector<8x256xbf16>, vector<8x256xbf16>, vector<8x256xbf16> -> vector<72x256xbf16>
      %cst_36 = arith.constant dense<0.000000e+00> : vector<8x256xf32>
      %99 = tpu.matmul %4, %98, %cst_36 {dimension_numbers = #tpu.dot_dimension_numbers<[1], [0], [0], [1], [0, 0, 1, 1], [], []>} : vector<8x72xbf16>, vector<72x256xbf16>, vector<8x256xf32> -> vector<8x256xf32>
      %cst_37 = arith.constant dense<0.000000e+00> : vector<8xf32>
      %100 = vector.multi_reduction <add>, %99, %cst_37 [1] : vector<8x256xf32> to vector<8xf32>
      %101 = vector.shape_cast %100 : vector<8xf32> to vector<8x1xf32>
      %102 = arith.mulf %99, %99 : vector<8x256xf32>
      %cst_38 = arith.constant dense<0.000000e+00> : vector<8xf32>
      %103 = vector.multi_reduction <add>, %102, %cst_38 [1] : vector<8x256xf32> to vector<8xf32>
      %104 = vector.shape_cast %103 : vector<8xf32> to vector<8x1xf32>
      %105 = tpu.concatenate %101, %104 in 1 : vector<8x1xf32>, vector<8x1xf32> -> vector<8x2xf32>
      %cst_39 = arith.constant dense<0.000000e+00> : vector<8x2xf32>
      %106 = tpu.matmul %1, %105, %cst_39 {dimension_numbers = #tpu.dot_dimension_numbers<[1], [0], [0], [1], [0, 0, 1, 1], [], []>} : vector<8x8xf32>, vector<8x2xf32>, vector<8x2xf32> -> vector<8x2xf32>
      %107 = vector.extract_strided_slice %106 {offsets = [0, 0], sizes = [8, 1], strides = [1, 1]} : vector<8x2xf32> to vector<8x1xf32>
      %108 = vector.extract_strided_slice %106 {offsets = [0, 1], sizes = [8, 1], strides = [1, 1]} : vector<8x2xf32> to vector<8x1xf32>
      %109 = arith.mulf %107, %107 : vector<8x1xf32>
      %110 = arith.subf %108, %109 : vector<8x1xf32>
      %cst_40 = arith.constant 0.000000e+00 : f32
      %111 = vector.broadcast %cst_40 : f32 to vector<8x1xf32>
      %112 = arith.maximumf %110, %111 : vector<8x1xf32>
      %cst_41 = arith.constant 9.99999974E-6 : f32
      %113 = vector.broadcast %cst_41 : f32 to vector<8x1xf32>
      %114 = arith.addf %112, %113 : vector<8x1xf32>
      %115 = math.rsqrt %114 : vector<8x1xf32>
      %116 = arith.mulf %8, %115 : vector<8x1xf32>
      %117 = arith.mulf %107, %116 : vector<8x1xf32>
      %118 = arith.subf %9, %117 : vector<8x1xf32>
      %119 = vector.broadcast %116 : vector<8x1xf32> to vector<8x256xf32>
      %120 = arith.mulf %99, %119 : vector<8x256xf32>
      %121 = vector.broadcast %118 : vector<8x1xf32> to vector<8x256xf32>
      %122 = arith.addf %120, %121 : vector<8x256xf32>
      %cst_42 = arith.constant 0.000000e+00 : f32
      %123 = vector.broadcast %cst_42 : f32 to vector<8x256xf32>
      %124 = arith.maximumf %122, %123 : vector<8x256xf32>
      %125 = arith.truncf %124 : vector<8x256xf32> to vector<8x256xbf16>
      %cst_43 = arith.constant dense<0.000000e+00> : vector<32x256xf32>
      %126 = tpu.matmul %5, %125, %cst_43 {dimension_numbers = #tpu.dot_dimension_numbers<[1], [0], [0], [1], [0, 0, 1, 1], [], []>} : vector<32x8xbf16>, vector<8x256xbf16>, vector<32x256xf32> -> vector<32x256xf32>
      %cst_44 = arith.constant dense<0.000000e+00> : vector<32xf32>
      %127 = vector.multi_reduction <add>, %126, %cst_44 [1] : vector<32x256xf32> to vector<32xf32>
      %128 = vector.shape_cast %127 : vector<32xf32> to vector<32x1xf32>
      %129 = arith.mulf %126, %126 : vector<32x256xf32>
      %cst_45 = arith.constant dense<0.000000e+00> : vector<32xf32>
      %130 = vector.multi_reduction <add>, %129, %cst_45 [1] : vector<32x256xf32> to vector<32xf32>
      %131 = vector.shape_cast %130 : vector<32xf32> to vector<32x1xf32>
      %132 = tpu.concatenate %128, %131 in 1 : vector<32x1xf32>, vector<32x1xf32> -> vector<32x2xf32>
      %cst_46 = arith.constant dense<0.000000e+00> : vector<32x2xf32>
      %133 = tpu.matmul %2, %132, %cst_46 {dimension_numbers = #tpu.dot_dimension_numbers<[1], [0], [0], [1], [0, 0, 1, 1], [], []>} : vector<32x32xf32>, vector<32x2xf32>, vector<32x2xf32> -> vector<32x2xf32>
      %134 = vector.extract_strided_slice %133 {offsets = [0, 0], sizes = [32, 1], strides = [1, 1]} : vector<32x2xf32> to vector<32x1xf32>
      %135 = vector.extract_strided_slice %133 {offsets = [0, 1], sizes = [32, 1], strides = [1, 1]} : vector<32x2xf32> to vector<32x1xf32>
      %136 = arith.mulf %134, %134 : vector<32x1xf32>
      %137 = arith.subf %135, %136 : vector<32x1xf32>
      %cst_47 = arith.constant 0.000000e+00 : f32
      %138 = vector.broadcast %cst_47 : f32 to vector<32x1xf32>
      %139 = arith.maximumf %137, %138 : vector<32x1xf32>
      %cst_48 = arith.constant 9.99999974E-6 : f32
      %140 = vector.broadcast %cst_48 : f32 to vector<32x1xf32>
      %141 = arith.addf %139, %140 : vector<32x1xf32>
      %142 = math.rsqrt %141 : vector<32x1xf32>
      %143 = arith.mulf %10, %142 : vector<32x1xf32>
      %144 = arith.mulf %134, %143 : vector<32x1xf32>
      %145 = arith.subf %11, %144 : vector<32x1xf32>
      %146 = vector.broadcast %143 : vector<32x1xf32> to vector<32x256xf32>
      %147 = arith.mulf %126, %146 : vector<32x256xf32>
      %148 = vector.broadcast %145 : vector<32x1xf32> to vector<32x256xf32>
      %149 = arith.addf %147, %148 : vector<32x256xf32>
      %150 = arith.index_cast %14 : i32 to index
      %c0_49 = arith.constant 0 : index
      %c0_50 = arith.constant 0 : index
      %151 = vector.load %arg4[%150, %c0_49, %c0_50] : memref<4x32x256xf32, #tpu.memory_space<vmem>>, vector<1x32x256xf32>
      %152 = vector.shape_cast %151 : vector<1x32x256xf32> to vector<32x256xf32>
      %153 = arith.addf %149, %152 : vector<32x256xf32>
      %cst_51 = arith.constant 0.000000e+00 : f32
      %154 = vector.broadcast %cst_51 : f32 to vector<32x256xf32>
      %155 = arith.maximumf %153, %154 : vector<32x256xf32>
      %156 = arith.index_cast %14 : i32 to index
      %c0_52 = arith.constant 0 : index
      %c0_53 = arith.constant 0 : index
      %157 = vector.load %arg14[%156, %c0_52, %c0_53] : memref<4x32x256xf32, #tpu.memory_space<vmem>>, vector<1x32x256xf32>
      %158 = vector.shape_cast %157 : vector<1x32x256xf32> to vector<32x256xf32>
      %159 = vector.shape_cast %155 : vector<32x256xf32> to vector<1x32x256xf32>
      tpu.vector_store %arg14[%156, %c0_52, %c0_53], %159 {strides = array<i32>} : memref<4x32x256xf32, #tpu.memory_space<vmem>>, vector<1x32x256xf32>,
    }
    %c4_i32_24 = arith.constant 4 : i32
    return
  }
  func.func @transform_0(%arg0: i32) -> (i32, i32, i32) {
    %c0_i32 = arith.constant 0 : i32
    %c0_i32_0 = arith.constant 0 : i32
    %c0_i32_1 = arith.constant 0 : i32
    %c0_i32_2 = arith.constant 0 : i32
    return %c0_i32, %c0_i32_0, %c0_i32_1 : i32, i32, i32
  }
  func.func @transform_1(%arg0: i32) -> (i32, i32) {
    %c0_i32 = arith.constant 0 : i32
    %c0_i32_0 = arith.constant 0 : i32
    %c0_i32_1 = arith.constant 0 : i32
    return %c0_i32, %c0_i32_0 : i32, i32
  }
  func.func @transform_2(%arg0: i32) -> (i32, i32) {
    %c0_i32 = arith.constant 0 : i32
    %c0_i32_0 = arith.constant 0 : i32
    %c0_i32_1 = arith.constant 0 : i32
    return %c0_i32, %c0_i32_0 : i32, i32
  }
  func.func @transform_3(%arg0: i32) -> (i32, i32, i32) {
    %c0_i32 = arith.constant 0 : i32
    %c0_i32_0 = arith.constant 0 : i32
    %c0_i32_1 = arith.constant 0 : i32
    return %arg0, %c0_i32, %c0_i32_0 : i32, i32, i32
  }
  func.func @transform_4(%arg0: i32) -> (i32, i32) {
    %c0_i32 = arith.constant 0 : i32
    %c0_i32_0 = arith.constant 0 : i32
    %c0_i32_1 = arith.constant 0 : i32
    return %c0_i32, %c0_i32_0 : i32, i32
  }
  func.func @transform_5(%arg0: i32) -> (i32, i32) {
    %c0_i32 = arith.constant 0 : i32
    %c0_i32_0 = arith.constant 0 : i32
    %c0_i32_1 = arith.constant 0 : i32
    return %c0_i32, %c0_i32_0 : i32, i32
  }
  func.func @transform_6(%arg0: i32) -> (i32, i32) {
    %c0_i32 = arith.constant 0 : i32
    %c0_i32_0 = arith.constant 0 : i32
    %c0_i32_1 = arith.constant 0 : i32
    return %c0_i32, %c0_i32_0 : i32, i32
  }
  func.func @transform_7(%arg0: i32) -> (i32, i32) {
    %c0_i32 = arith.constant 0 : i32
    %c0_i32_0 = arith.constant 0 : i32
    %c0_i32_1 = arith.constant 0 : i32
    return %c0_i32, %c0_i32_0 : i32, i32
  }
  func.func @transform_8(%arg0: i32) -> (i32, i32) {
    %c0_i32 = arith.constant 0 : i32
    %c0_i32_0 = arith.constant 0 : i32
    %c0_i32_1 = arith.constant 0 : i32
    return %c0_i32, %c0_i32_0 : i32, i32
  }
  func.func @transform_9(%arg0: i32) -> (i32, i32) {
    %c0_i32 = arith.constant 0 : i32
    %c0_i32_0 = arith.constant 0 : i32
    %c0_i32_1 = arith.constant 0 : i32
    return %c0_i32, %c0_i32_0 : i32, i32
  }
  func.func @transform_10(%arg0: i32) -> (i32, i32) {
    %c0_i32 = arith.constant 0 : i32
    %c0_i32_0 = arith.constant 0 : i32
    %c0_i32_1 = arith.constant 0 : i32
    return %c0_i32, %c0_i32_0 : i32, i32
  }
  func.func @transform_11(%arg0: i32) -> (i32, i32) {
    %c0_i32 = arith.constant 0 : i32
    %c0_i32_0 = arith.constant 0 : i32
    %c0_i32_1 = arith.constant 0 : i32
    return %c0_i32, %c0_i32_0 : i32, i32
  }
  func.func @transform_12(%arg0: i32) -> (i32, i32) {
    %c0_i32 = arith.constant 0 : i32
    %c0_i32_0 = arith.constant 0 : i32
    %c0_i32_1 = arith.constant 0 : i32
    return %c0_i32, %c0_i32_0 : i32, i32
  }
  func.func @transform_13(%arg0: i32) -> (i32, i32, i32) {
    %c0_i32 = arith.constant 0 : i32
    %c0_i32_0 = arith.constant 0 : i32
    %c0_i32_1 = arith.constant 0 : i32
    return %arg0, %c0_i32, %c0_i32_0 : i32, i32, i32
  }
}

</mosaic_0001>

<bundles_post_ra>
// kernel: tpu_custom_call.1
= control target key start
LH: loop header
LB: loop body
LE: loop exit
PB: predicated region body
PF: predicated region fallthrough
CT: control target
= control target key end

     0   :  { %s2225_s0 = inlined_call_operand.vmem [shape: f32[9,1,256], index: 0, kind: input, shape index: {}]   ;;  %s2226_s1 = inlined_call_operand.vmem [shape: f32[8,8], index: 1, kind: input, shape index: {}]   ;;  %s2227_s2 = inlined_call_operand.vmem [shape: f32[32,32], index: 2, kind: input, shape index: {}]   ;;  %s2228_s3 = inlined_call_operand.hbm [shape: f32[8,32,256], index: 3, kind: input, shape index: {}]   ;;  %s2229_s4 = inlined_call_operand.vmem [shape: bf16[8,32], index: 4, kind: input, shape index: {}]   ;;  %s2230_s5 = inlined_call_operand.vmem [shape: f32[8,1], index: 5, kind: input, shape index: {}]   ;;  %s2231_s6 = inlined_call_operand.vmem [shape: f32[8,1], index: 6, kind: input, shape index: {}]   ;;  %s2232_s7 = inlined_call_operand.vmem [shape: bf16[8,72], index: 7, kind: input, shape index: {}]   ;;  %s2233_s8 = inlined_call_operand.vmem [shape: f32[8,1], index: 8, kind: input, shape index: {}]   ;;  %s2234_s9 = inlined_call_operand.vmem [shape: f32[8,1], index: 9, kind: input, shape index: {}]   ;;  %s2235_s10 = inlined_call_operand.vmem [shape: bf16[32,8], index: 10, kind: input, shape index: {}]   ;;  %s2236_s11 = inlined_call_operand.vmem [shape: f32[32,1], index: 11, kind: input, shape index: {}]   ;;  %s2237_s12 = inlined_call_operand.vmem [shape: f32[32,1], index: 12, kind: input, shape index: {}]   ;;  %s2238_s13 = inlined_call_operand.hbm [shape: f32[8,32,256], index: 13, kind: output, shape index: {}]  }
   0x1   :  { %2255 = sst [smem:[#allocation22_spill]] %s2225_s0 }
   0x2   :  { %2256 = sst [smem:[#allocation23_spill]] %s2226_s1 }
   0x3   :  { %2257 = sst [smem:[#allocation24_spill]] %s2238_s13 }
   0x4   :  { %18 = vsyncpa [#allocation3], 0 }
   0x5   :  { %20 = vsyncpa [#allocation3 + $0x1], 0 }
   0x6   :  { %21 = vsyncpa [#allocation4], 0 }
   0x7   :  { %23 = vsyncpa [#allocation4 + $0x1], 0  ;;  %s1678_s25 = smov 0   ;;  %s1680_s26 = smov 0  }
   0x8   :  { %s1682_s27 = smov 0   ;;  %s1684_s28 = smov 0  }
   0x9 LB: > { %2258 = sst [smem:[#allocation8_spill]] %s1577_s25  ;;  %s1699_s29 = sadd.s32 4294967295, %s1589_s28   ;;  %s1589_s28 = sphi %s1684_s28, %s2292_s28   ;;  %s1585_s27 = sphi %s1682_s27, %s2294_s27   ;;  %s1581_s26 = sphi %s1680_s26, %s2296_s26   ;;  %s1577_s25 = sphi %s1678_s25, %s2295_s25  }
   0xa   : > { %2259 = sst [smem:[#allocation9_spill]] %s1585_s27  ;;  %s1357_s30 = sadd.s32 4294967294, %s1589_s28  }
   0xb   : > { %s1703_s14 = sadd.s32 1, %s1589_s28   ;;  %s99_s15 = sadd.s32 1, %s1585_s27 }
   0xc   : > { %2260 = sst [smem:[#allocation10_spill]] %s1703_s14  ;;  %s96_s16 = ssub.s32 %s1589_s28, %s1703_s14 }
   0xd   : > { %p106_p0 = scmp.ne.s32.totalorder %s1585_s27, %s1581_s26  ;;  %p97_p1 = scmp.eq.s32.totalorder %s96_s16, 0 }
   0xe   : > { %p107_p2 = scmp.eq.s32.totalorder %s1589_s28, 0  ;;  %p112_p3 = scmp.ne.s32.totalorder %s1581_s26, %s1577_s25 }
   0xf   : > { %p113_p4 = scmp.eq.s32.totalorder %s1699_s29, 0  ;;  %p325_p7 = scmp.eq.s32.totalorder %s1699_s29, 1 }
  0x10   : > { %s1715_s17 = scalar_select %p97_p1, %s1585_s27, %s99_s15  }
  0x11   : > { %p1717_p5 = por %p107_p2, %p106_p0  ;;  %p1721_p6 = por %p113_p4, %p112_p3 }
  0x12   : > { %2261 = sst [smem:[#allocation11_spill]] %s1715_s17  ;;  %p331_p8 = scmp.eq.s32.totalorder %s1357_s30, 1 }
  0x13   : > { %p1419_p10 = scmp.lt.s32.totalorder %s1589_s28, 2  ;;  %p1728_p11 = por %p325_p7, %p106_p0 }
  0x14   : > { %p1732_p12 = por %p331_p8, %p112_p3  ;;  %s387_s22 = sand.u32 1, %s1585_s27  }
  0x15   : > { %s2264_s20 = scalar_select %p1728_p11, 1, 0 }
  0x16   : > { %s2266_s21 = scalar_select %p1732_p12, 1, 0 }
  0x17   : > { %2265 = sst [smem:[#allocation12_spill]] %s2264_s20  ;;  %s1399_s23 = sshll.u32 %s1589_s28, 8 }
  0x18   : > { %2267 = sst [smem:[#allocation13_spill]] %s2266_s21  ;;  %s1360_s24 = sshll.u32 %s387_s22, 8 }
  0x19   : > { %s397_s17 = scalar_lea.hbm %s2228_s3, %s1399_s23  ;;  %s391_s30 = scalar_lea.vmem [#allocation2], %s1360_s24 }
  0x1a   : > { %s398_s14 = sshll.u32 %s397_s17, 4  ;;  %s400_s25 = sshll.u32 %s391_s30, 4  ;;  %s399_s14 = int_to_ptr.hbm [resolvable:$true] %s398_s14  ;;  %s401_s25 = int_to_ptr.vmem [resolvable:$true] %s400_s25 }
  0x1b   : > { %p1743_p13 = pnand %p1419_p10, %p1717_p5  ;;  %p1364_p0 = scmp.ge.s32.totalorder %s1589_s28, 1 }
  0x1c   : > { %p408_p1 = scmp.lt.s32.totalorder %s1589_s28, 3  ;;  %s388_s27 = scalar_lea.sflag [#allocation3], %s387_s22 }
  0x1d   : > { %s1489_s21 = sshra.s32 %s399_s14, 4  ;;  %p1493_p3 = pneg %p1743_p13  ;;  %s1490_s21 = int_to_ptr.hbm [resolvable:$true] %s1489_s21 }
  0x1e   : > { %s1491_s20 = scalar_lea.hbm %s1490_s21, 256  ;;  %s1496_s18 = scalar_lea.hbm %s2228_s3, 512 }
  0x1f   : > { %p1492_p2 = scmp.ne.s32.totalorder %s1490_s21, %s1491_s20  ;;  %p1497_p5 = scmp.lt.s32.totalorder %s1490_s21, %s2228_s3 }
  0x20   : > { %p1498_p8 = scmp.lt.s32.totalorder %s1496_s18, %s1491_s20 }
  0x21   : > { %p1494_p4 = pnand %p1493_p3, %p1492_p2 }
  0x22   : > { %p1499_p10 = por %p1498_p8, %p1497_p5 }
  0x23   : > { %p1495_p7 = pneg %p1494_p4 }
  0x25   : > { %p1500_p9 = pnand %p1499_p10, %p1495_p7 }
  0x27   : > { %1503 = shalt.err (!%p1500_p9)
}
  0x28   : > { %s1595_s22 = smov 256   ;;  %s1596_s16 = smov 16  }
  0x29   : > { %1414 = dma.hbm_to_vmem [thread:$0]  (!%p1743_p13), %s399_s14, 4096, %s401_s25, %s388_s27, %s1595_s22, %s1595_s22, %s1596_s16  }
  0x2a   : > { %p409_p2 = pnand %p1364_p0, %p408_p1 }
  0x2c   : > { %412 = sbr.rel (%p409_p2) target bundleno = 2549 (0x9f5), region = 72 }
  0x31   : > { %s1764_s30 = sand.u32 1, %s1581_s26  }
  0x32   : > { %s1365_s20 = sshll.u32 %s1764_s30, 8  ;;  %s415_s21 = scalar_lea.sflag [#allocation3], %s1764_s30 }
  0x33   : > { %s1770_s17 = scalar_lea.vmem [#allocation2], %s1365_s20 }
  0x34   : > { %1568 = dma.done.wait (%p1721_p6), %s415_s21, 4096  }
  0x35   : > { %1570 = vsyncadd (%p1721_p6), %s415_s21, 4294963200  ;;  %s2269_s0 = sld [smem:[#allocation22_spill]]  ;;  %v1829_v10 = vld [vmem:[%s2227_s2] sm:$0xff]  ;;  %v1834_v11 = vld [vmem:[%s2227_s2 + $0x8] sm:$0xff]  ;;  %s1938_s23 = scalar_lea.vmem [#allocation5], %s1365_s20 }
  0x36   : > { %s2278_s1 = sld [smem:[#allocation23_spill]]  ;;  %v1839_v12 = vld [vmem:[%s2227_s2 + $0x10] sm:$0xff]  ;;  %v1844_v13 = vld [vmem:[%s2227_s2 + $0x18] sm:$0xff]  ;;  %v1849_v14 = vld [vmem:[%s2229_s4] sm:$0xf]  ;;  %s1940_s18 = smov 0  }
  0x37   : > { %v1854_v15 = vld [vmem:[%s2232_s7] sm:$0xf]  ;;  %v1864_v17 = vld [vmem:[%s2235_s10] sm:$0xf0]  ;;  %v1869_v18 = vld [vmem:[%s2235_s10 + $0x8] sm:$0xf] }
  0x38   : > { %v1859_v16 = vld [vmem:[%s2235_s10] sm:$0xf]  ;;  %v1874_v19 = vld [vmem:[%s2235_s10 + $0x8] sm:$0xf0]  ;;  %v1909_v26 = vld [vmem:[%s2236_s11 + $0x10] sm:$0xff] }
  0x39   : > { %v1879_v20 = vld [vmem:[%s2230_s5] sm:$0xff]  ;;  %v1904_v25 = vld [vmem:[%s2236_s11 + $0x8] sm:$0xff]  ;;  %v1914_v27 = vld [vmem:[%s2236_s11 + $0x18] sm:$0xff] }
  0x3a   : > { %v1884_v21 = vld [vmem:[%s2231_s6] sm:$0xff]  ;;  %v1924_v29 = vld [vmem:[%s2237_s12 + $0x8] sm:$0xff]  ;;  %v1929_v30 = vld [vmem:[%s2237_s12 + $0x10] sm:$0xff] }
  0x3b   : > { %v1779_v0 = vld [vmem:[%s2269_s0] sm:$0x3]  ;;  %v1784_v1 = vld [vmem:[%s2269_s0 + $0x2] sm:$0x3]  ;;  %v1789_v2 = vld [vmem:[%s2269_s0 + $0x4] sm:$0x3] }
  0x3c   : > { %2270 = vst [vmem:[#allocation14_spill] sm:$0xff] %v1779_v0  ;;  %v1794_v3 = vld [vmem:[%s2269_s0 + $0x6] sm:$0x3]  ;;  %v1799_v4 = vld [vmem:[%s2269_s0 + $0x8] sm:$0x3]  ;;  %v1934_v31 = vld [vmem:[%s2237_s12 + $0x18] sm:$0xff] }
  0x3d   : > { %2271 = vst [vmem:[#allocation15_spill] sm:$0xff] %v1789_v2  ;;  %v1804_v5 = vld [vmem:[%s2269_s0 + $0xa] sm:$0x3]  ;;  %v1809_v6 = vld [vmem:[%s2269_s0 + $0xc] sm:$0x3]  ;;  %v1824_v9 = vld [vmem:[%s2278_s1] sm:$0xff] }
  0x3e   : > { %2272 = vst [vmem:[#allocation16_spill] sm:$0xff] %v1794_v3  ;;  %v1814_v7 = vld [vmem:[%s2269_s0 + $0xe] sm:$0x3]  ;;  %v1819_v8 = vld [vmem:[%s2269_s0 + $0x10] sm:$0x3]  ;;  %v1889_v22 = vld [vmem:[%s2233_s8] sm:$0xff] }
  0x3f   : > { %2273 = vst [vmem:[#allocation17_spill] sm:$0xff] %v1799_v4  ;;  %v1894_v23 = vld [vmem:[%s2234_s9] sm:$0xff] }
  0x40   : > { %2274 = vst [vmem:[#allocation18_spill] sm:$0xff] %v1804_v5  ;;  %v1899_v24 = vld [vmem:[%s2236_s11] sm:$0xff] }
  0x41   : > { %2275 = vst [vmem:[#allocation19_spill] sm:$0xff] %v1809_v6  ;;  %v1919_v28 = vld [vmem:[%s2237_s12] sm:$0xff] }
  0x42   : > { %2276 = vst [vmem:[#allocation20_spill] sm:$0xff] %v1814_v7 }
  0x43   : > { %2277 = vst [vmem:[#allocation21_spill] sm:$0xff] %v1819_v8 }
  0x44 LB: >> { %v2280_v0 = vld [vmem:[#allocation14_spill] sm:$0xff]  ;;  %v2282_v2 = vld [vmem:[#allocation15_spill] sm:$0xff]  ;;  %s1402_s24 = sshll.u32 %s1593_s18, 6  ;;  %vm518_vm0 = vcmask 261120   ;;  %vm556_vm1 = vcmask 7168   ;;  %vm558_vm2 = vcmask 64512   ;;  %s1593_s18 = sphi %s1940_s18, %s502_s18  }
  0x45   : >> { %v2279_v3 = vld [vmem:[#allocation16_spill] sm:$0xff]  ;;  %s505_s15 = scalar_lea.vmem %s1770_s17, %s1402_s24 [#allocation2]  ;;  %s1597_s20 = smov 1   ;;  %vm798_vm8 = vcmask 1043456   ;;  %vm831_vm15 = vcmask 588800  }
  0x46   : >> { %v2286_v4 = vld [vmem:[#allocation17_spill] sm:$0xff]  ;;  %v1949_v32 = vld [vmem:[%s505_s15 + $0x20] sm:$0xff]  ;;  %v1951_v33 = vld [vmem:[%s505_s15 + $0x30] sm:$0xff]  ;;  %s1598_s19 = smov 127   ;;  %s1600_s22 = smov 111  }
  0x47   : >> { %v2285_v5 = vld [vmem:[#allocation18_spill] sm:$0xff]  ;;  %v1953_v34 = vld [vmem:[%s505_s15 + $0x28] sm:$0xff]  ;;  %v516_v35 = vpack.c.bf16 %v1951_v33, %v1949_v32  ;;  %v1957_v36 = vld [vmem:[%s505_s15 + $0x38] sm:$0xff]  ;;  %s1601_s16 = smov 113   ;;  %s1602_s21 = smov 112  }
  0x48   : >> { %v2284_v6 = vld [vmem:[#allocation19_spill] sm:$0xff]  ;;  %v1959_v37 = vld [vmem:[%s505_s15] sm:$0xff]  ;;  %v1961_v38 = vld [vmem:[%s505_s15 + $0x10] sm:$0xff]  ;;  %v517_v39 = vpack.c.bf16 %v1957_v36, %v1953_v34  ;;  %s1603_s13 = smov 15   ;;  %s1604_s25 = smov 17  }
  0x49   : >> { %v2281_v7 = vld [vmem:[#allocation20_spill] sm:$0xff]  ;;  %v1965_v40 = vld [vmem:[%s505_s15 + $0x8] sm:$0xff]  ;;  %v1967_v41 = vld [vmem:[%s505_s15 + $0x18] sm:$0xff]  ;;  %528 = vmatpush.bf16.msra.mxu0 %v516_v35  ;;  %v514_v42 = vpack.c.bf16 %v1961_v38, %v1959_v37  ;;  %s1605_s27 = smov 16   ;;  %s2168_s14 = scalar_lea.vmem %s1938_s23, %s1402_s24 [#allocation5] }
  0x4a   : >> { %v2283_v8 = vld [vmem:[#allocation21_spill] sm:$0xff]  ;;  %541 = vmatpush.bf16.msra.mxu1 %v517_v39  ;;  %v515_v43 = vpack.c.bf16 %v1967_v41, %v1965_v40  ;;  %s502_s18 = sadd.s32 1, %s1593_s18  }
  0x4b   : >> { %p499_p6 = scmp.ge.s32.totalorder %s502_s18, 4  }
  0x4c   : > { %s1405_s15 = sshll.u32 (%p499_p6), %s1699_s29, 8 }
  0x4d   : >> { %529 = vmatpush.bf16.msra.mxu0 %v514_v42 }
  0x4e   : >> { %542 = vmatpush.bf16.msra.mxu1 %v515_v43 }
  0x50   : >> { %1369 = vmatmul.msk.bf16.vlgmr.msra.gmra.mxu0 %vm518_vm0, %v1849_v14 }
  0x51   : >> { %1370 = vmatmul.msk.bf16.vlgmr.msra.gmra.mxu1 %vm518_vm0, %v1849_v14 }
  0xcd   : >> { %v531_v44 = vpop.f32.mrf.mxu0 }
  0xce   : >> { %v544_v45 = vpop.f32.mrf.mxu1  ;;  %v551_v47 = vmul.f32 %v531_v44, %v531_v44 }
  0xcf   : >> { %v548_v46 = vadd.f32 %v544_v45, %v531_v44  ;;  %v552_v48 = vmul.f32 %v544_v45, %v544_v45 }
  0xd1   : >> { %549 = vadd.xlane.f32.xlu0 %v548_v46  ;;  %v553_v51 = vadd.f32 %v552_v48, %v551_v47  ;;  %v1599_v46 = vmov 0  }
  0xd2   : >> { %1474 = vset.pattern.permute.xlu2 %v1599_v46  ;;  %1476 = vset.pattern.permute.xlu0 %v1599_v46 }
  0xd3   : >> { %1475 = vset.pattern.permute.xlu1 %v1599_v46 }
  0xd5   : >> { %v533_v49 = vpop.f32.mrf.mxu0 }
  0xd6   : >> { %v546_v50 = vpop.f32.mrf.mxu1 }
  0xd9   : >> { %554 = vadd.xlane.f32.xlu0 %v553_v51 }
 0x144   : >> { %v550_v52 = vpop.xlane.xlu0 %549 }
 0x14c   : >> { %v555_v53 = vpop.xlane.xlu0 %554 }
 0x14d   : >> { %v557_v54 = vsel %vm556_vm1, %v550_v52, %v555_v53 }
 0x14e   : >> { %577 = vmatpush.msrb.mxu0 %v557_v54 }
 0x14f   : >> { %1371 = vmatmul.msk.f32.vlgmr.msrb.gmra.mxu0 %vm558_vm2, %v1824_v9 }
 0x1cc   : >> { %v579_v55 = vpop.f32.mrf.mxu0 }
 0x1cd   : >> { %v582_v56 = vmul.f32 %v579_v55, %v579_v55 }
 0x1cf   : >> { %584 = vrot.lane.b32.xlu1 %v582_v56, %s1597_s20 }
 0x241   : >> { %v585_v57 = vpop.permute.xlu1 %584 }
 0x242   : >> { %v587_v58 = vsub.f32 %v579_v55, %v585_v57 }
 0x244   : >> { %v588_v59 = vmax.f32 %v587_v58, 0.0  ;;  %v686_v58 = vperm.slane %v2286_v4, 0 }
 0x246   : >> { %v589_v60 = vadd.f32 1e-05, %v588_v59  ;;  %v687_v59 = vperm.slane %v2286_v4, 1 }
 0x248   : >> { %1477 = vrsqrt.f32 %v589_v60  ;;  %vm596_vm4 = vweird.f32 %v589_v60 }
 0x24e   : >> { %v1478_v61 = vpop.eup %1477 }
 0x24f   : >> { %v591_v62 = vmul.f32 %v1478_v61, %v589_v60  ;;  %vm597_vm3 = vweird.f32 %v1478_v61 }
 0x250   : >> { %vm598_vm5 = vmor %vm596_vm4, %vm597_vm3 }
 0x251   : >> { %v592_v63 = vmul.f32 %v1478_v61, %v591_v62 }
 0x253   : >> { %v593_v35 = vmul.f32 0.5, %v592_v63 }
 0x255   : >> { %v594_v39 = vsub.f32 1.5, %v593_v35 }
 0x257   : >> { %v595_v42 = vmul.f32 %v1478_v61, %v594_v39  ;;  %v746_v39 = vperm.slane %v2283_v8, 0 }
 0x259   : >> { %v599_v43 = vsel %vm598_vm5, %v1478_v61, %v595_v42  ;;  %v747_v42 = vperm.slane %v2283_v8, 1 }
 0x25a   : >> { %601 = vrot.lane.b32.xlu1 %v599_v43, %s1598_s19 }
 0x2cc   : >> { %v602_v47 = vpop.permute.xlu1 %601 }
 0x2cd   : >> { %v604_v48 = vmul.f32 %v602_v47, %v1879_v20 }
 0x2cf   : >> { %609 = vperm.xlu2 %1474, %v604_v48   ;;  %v605_v49 = vmul.f32 %v604_v48, %v579_v55 }
 0x2d1   : >> { %v606_v50 = vsub.f32 %v1884_v21, %v605_v49 }
 0x2d7   : >> { %616 = vperm.xlu2 %1474, %v606_v50  }
 0x329   : >> { %v610_v51 = vpop.permute.xlu2 %609 }
 0x32a   : >> { %v612_v52 = vmul.f32 %v610_v51, %v531_v44  ;;  %v613_v53 = vmul.f32 %v610_v51, %v544_v45  ;;  %v627_v45 = vlaneseq }
 0x32c   : >> { %v1992_v35 = vand.u32 127, %v627_v45  ;;  %v702_v45 = vperm.slane %v2285_v5, 1 }
 0x32e   : >> { %vm742_vm6 = vcmp.lt.s32.totalorder %v1992_v35, 111  ;;  %vm712_vm7 = vcmp.lt.s32.totalorder %v1992_v35, 113  ;;  %vm697_vm9 = vcmp.lt.s32.totalorder %v1992_v35, 127  ;;  %vm727_vm10 = vcmp.lt.s32.totalorder %v1992_v35, 112 }
 0x32f   : >> { %vm659_vm11 = vcmp.lt.s32.totalorder %v1992_v35, 15  ;;  %vm629_vm12 = vcmp.lt.s32.totalorder %v1992_v35, 17  ;;  %vm674_vm13 = vcmp.lt.s32.totalorder %v1992_v35, 1  ;;  %vm644_vm14 = vcmp.lt.s32.totalorder %v1992_v35, 16 }
 0x331   : >> { %v617_v54 = vpop.permute.xlu2 %616 }
 0x332   : >> { %v619_v56 = vadd.f32 %v617_v54, %v612_v52  ;;  %v620_v57 = vadd.f32 %v617_v54, %v613_v53 }
 0x334   : >> { %v621_v60 = vmax.f32 %v619_v56, 0.0  ;;  %v622_v61 = vmax.f32 %v620_v57, 0.0  ;;  %v716_v56 = vperm.slane %v2284_v6, 0  ;;  %v717_v57 = vperm.slane %v2284_v6, 1 }
 0x336   : >> { %740 = vrot.lane.b32.xlu1 %v622_v61, %s1600_s22  ;;  %708 = vrot.lane.b32.xlu2 %v621_v60, %s1601_s16  ;;  %v690_v55 = vmul.f32 %v686_v58, %v621_v60  ;;  %v691_v62 = vmul.f32 %v687_v59, %v622_v61 }
 0x337   : >> { %738 = vrot.lane.b32.xlu0 %v621_v60, %s1600_s22  ;;  %s2288_s22 = sld [smem:[#allocation24_spill]] (%p499_p6) }
 0x338   : >> { %v1986_v63 = vpack.c.bf16 %v691_v62, %v690_v55  ;;  %v701_v62 = vperm.slane %v2285_v5, 0 }
 0x33d   : > { %s1539_s29 = scalar_lea.hbm (%p499_p6), %s2288_s22, 512 }
 0x33e   : >> { %710 = vrot.lane.b32.xlu1 %v622_v61, %s1601_s16  ;;  %723 = vrot.lane.b32.xlu2 %v621_v60, %s1602_s21  ;;  %s1271_s16 = scalar_lea.hbm (%p499_p6), %s2288_s22, %s1405_s15 }
 0x33f   : >> { %695 = vrot.lane.b32.xlu0 %v622_v61, %s1598_s19 }
 0x346   : >> { %725 = vrot.lane.b32.xlu1 %v622_v61, %s1602_s21  ;;  %693 = vrot.lane.b32.xlu2 %v621_v60, %s1598_s19  ;;  %s1272_s21 = sshll.u32 (%p499_p6), %s1938_s23, 4  ;;  %s1273_s21 = int_to_ptr.vmem [resolvable:$true] %s1272_s21 }
 0x347   : >> { %670 = vrot.lane.b32.xlu0 %v621_v60, %s1597_s20 }
 0x34e   : >> { %655 = vrot.lane.b32.xlu1 %v621_v60, %s1603_s13  ;;  %657 = vrot.lane.b32.xlu2 %v622_v61, %s1603_s13  ;;  %s1274_s13 = sshll.u32 (%p499_p6), %s1271_s16, 4  ;;  %s1275_s13 = int_to_ptr.hbm [resolvable:$true] %s1274_s13 }
 0x34f   : >> { %625 = vrot.lane.b32.xlu0 %v622_v61, %s1604_s25 }
 0x356   : >> { %672 = vrot.lane.b32.xlu1 %v622_v61, %s1597_s20  ;;  %623 = vrot.lane.b32.xlu2 %v621_v60, %s1604_s25  ;;  %s1259_s25 = scalar_lea.sflag (%p499_p6), [#allocation4], %s1764_s30 }
 0x35e   : >> { %640 = vrot.lane.b32.xlu1 %v621_v60, %s1605_s27  ;;  %642 = vrot.lane.b32.xlu2 %v622_v61, %s1605_s27  ;;  %s1533_s27 = sshra.s32 (%p499_p6), %s1275_s13, 4  ;;  %s1534_s27 = int_to_ptr.hbm [resolvable:$true] %s1533_s27 }
 0x35f   : > { %p1540_p1 = scmp.lt.s32.totalorder (%p499_p6), %s1534_s27, %s2288_s22 }
 0x390   : >> { %v709_v44 = vpop.permute.xlu2 %708 }
 0x398   : >> { %v724_v43 = vpop.permute.xlu2 %723 }
 0x3a0   : >> { %v694_v60 = vpop.permute.xlu2 %693 }
 0x3a8   : >> { %v741_v46 = vpop.permute.xlu1 %740 }
 0x3a9   : >> { %v739_v47 = vpop.permute.xlu0 %738 }
 0x3aa   : >> { %v743_v48 = vsel %vm742_vm6, %v739_v47, %v741_v46  ;;  %v744_v49 = vsel %vm742_vm6, %v741_v46, %v739_v47 }
 0x3ab   : >> { %v750_v50 = vmul.f32 %v746_v39, %v743_v48  ;;  %v751_v51 = vmul.f32 %v747_v42, %v744_v49  ;;  %v731_v49 = vperm.slane %v2281_v7, 0 }
 0x3ad   : >> { %v1997_v52 = vpack.c.bf16 %v751_v51, %v750_v50  ;;  %v732_v50 = vperm.slane %v2281_v7, 1 }
 0x3af   : >> { %v794_v53 = vunpack.c.l.b16 %v1997_v52 }
 0x3b0   : >> { %v711_v54 = vpop.permute.xlu1 %710 }
 0x3b1   : >> { %v696_v58 = vpop.permute.xlu0 %695  ;;  %v796_v59 = vpack.c.b16 %v794_v53, %v794_v53  ;;  %v713_v61 = vsel %vm712_vm7, %v709_v44, %v711_v54  ;;  %v714_v55 = vsel %vm712_vm7, %v711_v54, %v709_v44 }
 0x3b2   : >> { %v698_v42 = vsel %vm697_vm9, %v694_v60, %v696_v58  ;;  %v699_v46 = vsel %vm697_vm9, %v696_v58, %v694_v60  ;;  %v720_v47 = vmul.f32 %v716_v56, %v713_v61  ;;  %v721_v48 = vmul.f32 %v717_v57, %v714_v55  ;;  %v658_v58 = vpop.permute.xlu2 %657 }
 0x3b3   : >> { %v836_v39 = vsel %vm798_vm8, %v796_v59, 0  ;;  %v705_v51 = vmul.f32 %v701_v62, %v698_v42  ;;  %v706_v53 = vmul.f32 %v702_v45, %v699_v46  ;;  %v663_v62 = vperm.slane %v2282_v2, 0 }
 0x3b4   : >> { %844 = vmatpush.bf16.msra.mxu2 %v836_v39  ;;  %v2010_v54 = vpack.c.bf16 %v721_v48, %v720_v47 }
 0x3b5   : >> { %v2012_v8 = vpack.c.bf16 %v706_v53, %v705_v51 }
 0x3b6   : >> { %v784_v60 = vunpack.c.l.b16 %v2010_v54 }
 0x3b7   : >> { %v779_v55 = vunpack.c.l.b16 %v2012_v8 }
 0x3b8   : >> { %v726_v44 = vpop.permute.xlu1 %725  ;;  %v786_v42 = vpack.c.b16 %v784_v60, %v784_v60 }
 0x3b9   : >> { %v728_v4 = vsel %vm727_vm10, %v724_v43, %v726_v44  ;;  %v729_v5 = vsel %vm727_vm10, %v726_v44, %v724_v43  ;;  %v671_v57 = vpop.permute.xlu0 %670  ;;  %v664_v43 = vperm.slane %v2282_v2, 1  ;;  %v781_v47 = vpack.c.b16 %v779_v55, %v779_v55 }
 0x3ba   : >> { %v735_v6 = vmul.f32 %v731_v49, %v728_v4  ;;  %v736_v59 = vmul.f32 %v732_v50, %v729_v5  ;;  %v624_v51 = vpop.permute.xlu2 %623  ;;  %v678_v44 = vperm.slane %v2279_v3, 0  ;;  %v634_v55 = vperm.slane %v2280_v0, 1 }
 0x3bc   : >> { %v2014_v56 = vpack.c.bf16 %v736_v59, %v735_v6  ;;  %v774_v6 = vunpack.c.l.b16 %v1986_v63  ;;  %v679_v59 = vperm.slane %v2279_v3, 1 }
 0x3be   : >> { %v789_v61 = vunpack.c.l.b16 %v2014_v56  ;;  %v776_v50 = vpack.c.b16 %v774_v6, %v774_v6 }
 0x3c0   : >> { %v656_v4 = vpop.permute.xlu1 %655  ;;  %v791_v5 = vpack.c.b16 %v789_v61, %v789_v61  ;;  %v633_v61 = vperm.slane %v2280_v0, 0 }
 0x3c1   : >> { %v660_v45 = vsel %vm659_vm11, %v656_v4, %v658_v58  ;;  %v661_v39 = vsel %vm659_vm11, %v658_v58, %v656_v4  ;;  %v626_v53 = vpop.permute.xlu0 %625  ;;  %v817_v58 = vsel %vm798_vm8, %v776_v50, %v781_v47  ;;  %v648_v47 = vperm.slane %v1784_v1, 0 }
 0x3c2   : >> { %v825_v46 = vsel %vm798_vm8, %v786_v42, %v791_v5  ;;  %v667_v48 = vmul.f32 %v663_v62, %v661_v39  ;;  %v668_v49 = vmul.f32 %v664_v43, %v660_v45  ;;  %v630_v43 = vsel %vm629_vm12, %v624_v51, %v626_v53  ;;  %v643_v50 = vpop.permute.xlu2 %642 }
 0x3c3   : >> { %845 = vmatpush.bf16.msra.mxu2 %v825_v46  ;;  %v631_v4 = vsel %vm629_vm12, %v626_v53, %v624_v51  ;;  %v638_v46 = vmul.f32 %v634_v55, %v630_v43  ;;  %v795_v55 = vunpack.c.h.b16 %v1997_v52 }
 0x3c4   : >> { %v669_v60 = vpack.c.bf16 %v668_v49, %v667_v48  ;;  %v637_v6 = vmul.f32 %v633_v61, %v631_v4  ;;  %v649_v48 = vperm.slane %v1784_v1, 1 }
 0x3c5   : >> { %v797_v4 = vpack.c.b16 %v795_v55, %v795_v55 }
 0x3c6   : >> { %v764_v7 = vunpack.c.l.b16 %v669_v60 }
 0x3c7   : >> { %846 = vmatpush.bf16.msra.mxu2 %v817_v58  ;;  %v639_v58 = vpack.c.bf16 %v638_v46, %v637_v6  ;;  %v780_v6 = vunpack.c.h.b16 %v2012_v8  ;;  %v775_v46 = vunpack.c.h.b16 %v1986_v63 }
 0x3c8   : >> { %v673_v62 = vpop.permute.xlu1 %672  ;;  %v766_v3 = vpack.c.b16 %v764_v7, %v764_v7  ;;  %v785_v7 = vunpack.c.h.b16 %v2010_v54 }
 0x3c9   : >> { %v675_v5 = vsel %vm674_vm13, %v671_v57, %v673_v62  ;;  %v676_v45 = vsel %vm674_vm13, %v673_v62, %v671_v57  ;;  %v754_v62 = vunpack.c.l.b16 %v639_v58 }
 0x3ca   : >> { %v682_v39 = vmul.f32 %v678_v44, %v676_v45  ;;  %v683_v42 = vmul.f32 %v679_v59, %v675_v5  ;;  %v790_v5 = vunpack.c.h.b16 %v2014_v56  ;;  %v787_v52 = vpack.c.b16 %v785_v7, %v785_v7 }
 0x3cb   : >> { %v756_v45 = vpack.c.b16 %v754_v62, %v754_v62 }
 0x3cc   : >> { %v684_v2 = vpack.c.bf16 %v683_v42, %v682_v39 }
 0x3ce   : >> { %v769_v49 = vunpack.c.l.b16 %v684_v2  ;;  %v770_v54 = vunpack.c.h.b16 %v684_v2 }
 0x3d0   : >> { %v641_v0 = vpop.permute.xlu1 %640  ;;  %v771_v51 = vpack.c.b16 %v769_v49, %v769_v49  ;;  %v765_v49 = vunpack.c.h.b16 %v669_v60 }
 0x3d1   : >> { %v645_v53 = vsel %vm644_vm14, %v641_v0, %v643_v50  ;;  %v646_v57 = vsel %vm644_vm14, %v643_v50, %v641_v0  ;;  %v839_v0 = vsel %vm798_vm8, %v797_v4, 0 }
 0x3d2   : >> { %v652_v44 = vmul.f32 %v648_v47, %v646_v57  ;;  %v653_v59 = vmul.f32 %v649_v48, %v645_v53  ;;  %v809_v61 = vsel %vm798_vm8, %v766_v3, %v771_v51  ;;  %v792_v3 = vpack.c.b16 %v790_v5, %v790_v5 }
 0x3d3   : >> { %847 = vmatpush.bf16.msra.mxu2 %v809_v61  ;;  %v782_v47 = vpack.c.b16 %v780_v6, %v780_v6  ;;  %v777_v48 = vpack.c.b16 %v775_v46, %v775_v46  ;;  %v772_v51 = vpack.c.b16 %v770_v54, %v770_v54  ;;  %v767_v8 = vpack.c.b16 %v765_v49, %v765_v49 }
 0x3d4   : >> { %v654_v35 = vpack.c.bf16 %v653_v59, %v652_v44  ;;  %v829_v56 = vsel %vm798_vm8, %v787_v52, %v792_v3  ;;  %v755_v57 = vunpack.c.h.b16 %v639_v58 }
 0x3d5   : >> { %v821_v50 = vsel %vm798_vm8, %v777_v48, %v782_v47  ;;  %v813_v44 = vsel %vm798_vm8, %v767_v8, %v772_v51 }
 0x3d6   : >> { %v759_v43 = vunpack.c.l.b16 %v654_v35  ;;  %v760_v53 = vunpack.c.h.b16 %v654_v35  ;;  %v757_v59 = vpack.c.b16 %v755_v57, %v755_v57 }
 0x3d8   : >> { %v761_v39 = vpack.c.b16 %v759_v43, %v759_v43  ;;  %v762_v63 = vpack.c.b16 %v760_v53, %v760_v53 }
 0x3da   : >> { %v801_v42 = vsel %vm798_vm8, %v756_v45, %v761_v39  ;;  %v805_v61 = vsel %vm798_vm8, %v757_v59, %v762_v63 }
 0x3db   : >> { %848 = vmatpush.bf16.msra.mxu2 %v801_v42 }
 0x3de   : >> { %1372 = vmatmul.msk.bf16.vlgmr.msra.gmra.mxu2 %vm831_vm15, %v1854_v15 }
 0x3df   : >> { %857 = vmatpush.bf16.msrb.mxu2 %v839_v0 }
 0x3e3   : >> { %858 = vmatpush.bf16.msrb.mxu2 %v829_v56 }
 0x3e7   : >> { %859 = vmatpush.bf16.msrb.mxu2 %v821_v50 }
 0x3eb   : >> { %860 = vmatpush.bf16.msrb.mxu2 %v813_v44 }
 0x3ef   : >> { %861 = vmatpush.bf16.msrb.mxu2 %v805_v61 }
 0x3f2   : >> { %1373 = vmatmul.msk.bf16.vlgmr.msrb.gmra.mxu2 %vm831_vm15, %v1854_v15 }
 0x461   : >> { %v850_v2 = vpop.f32.mrf.mxu2 }
 0x462   : >> { %v870_v43 = vmul.f32 %v850_v2, %v850_v2 }
 0x469   : >> { %v852_v60 = vpop.f32.mrf.mxu2 }
 0x475   : >> { %v863_v55 = vpop.f32.mrf.mxu2 }
 0x476   : >> { %v867_v62 = vadd.f32 %v863_v55, %v850_v2  ;;  %v871_v35 = vmul.f32 %v863_v55, %v863_v55 }
 0x478   : >> { %868 = vadd.xlane.f32.xlu0 %v867_v62  ;;  %v872_v4 = vadd.f32 %v871_v35, %v870_v43 }
 0x47a   : >> { %873 = vadd.xlane.f32.xlu1 %v872_v4 }
 0x47d   : >> { %v865_v58 = vpop.f32.mrf.mxu2 }
 0x4eb   : >> { %v869_v5 = vpop.xlane.xlu0 %868 }
 0x4ed   : >> { %v874_v45 = vpop.xlane.xlu1 %873 }
 0x4ee   : >> { %v875_v39 = vsel %vm556_vm1, %v869_v5, %v874_v45 }
 0x4ef   : >> { %891 = vmatpush.msra.mxu0 %v875_v39  ;;  %v1378_v39 = vor.u32 %v1864_v17, %v1859_v16 }
 0x4f0   : >> { %1374 = vmatmul.msk.f32.vlgmr.msra.gmra.mxu0 %vm558_vm2, %v1824_v9 }
 0x56d   : >> { %v893_v7 = vpop.f32.mrf.mxu0 }
 0x56e   : >> { %v896_v42 = vmul.f32 %v893_v7, %v893_v7 }
 0x570   : >> { %898 = vrot.lane.b32.xlu2 %v896_v42, %s1597_s20 }
 0x5ca   : >> { %v899_v0 = vpop.permute.xlu2 %898 }
 0x5cb   : >> { %v901_v3 = vsub.f32 %v893_v7, %v899_v0 }
 0x5cd   : >> { %v902_v6 = vmax.f32 %v901_v3, 0.0 }
 0x5cf   : >> { %v903_v52 = vadd.f32 1e-05, %v902_v6 }
 0x5d1   : >> { %1479 = vrsqrt.f32 %v903_v52  ;;  %vm910_vm4 = vweird.f32 %v903_v52 }
 0x5d7   : >> { %v1480_v46 = vpop.eup %1479 }
 0x5d8   : >> { %v905_v56 = vmul.f32 %v1480_v46, %v903_v52  ;;  %vm911_vm3 = vweird.f32 %v1480_v46 }
 0x5d9   : >> { %vm912_vm5 = vmor %vm910_vm4, %vm911_vm3 }
 0x5da   : >> { %v906_v47 = vmul.f32 %v1480_v46, %v905_v56 }
 0x5dc   : >> { %v907_v54 = vmul.f32 0.5, %v906_v47 }
 0x5de   : >> { %v908_v48 = vsub.f32 1.5, %v907_v54 }
 0x5e0   : >> { %v909_v49 = vmul.f32 %v1480_v46, %v908_v48 }
 0x5e2   : >> { %v913_v50 = vsel %vm912_vm5, %v1480_v46, %v909_v49 }
 0x5e3   : >> { %915 = vrot.lane.b32.xlu2 %v913_v50, %s1598_s19 }
 0x63d   : >> { %v916_v51 = vpop.permute.xlu2 %915 }
 0x63e   : >> { %v918_v53 = vmul.f32 %v916_v51, %v1889_v22 }
 0x640   : >> { %923 = vperm.xlu2 %1474, %v918_v53   ;;  %v919_v8 = vmul.f32 %v918_v53, %v893_v7 }
 0x642   : >> { %v920_v57 = vsub.f32 %v1894_v23, %v919_v8 }
 0x648   : >> { %930 = vperm.xlu2 %1474, %v920_v57  }
 0x69a   : >> { %v924_v44 = vpop.permute.xlu2 %923 }
 0x69b   : >> { %v926_v63 = vmul.f32 %v924_v44, %v850_v2  ;;  %v927_v59 = vmul.f32 %v924_v44, %v863_v55  ;;  %v1382_v2 = vor.u32 %v1874_v19, %v1869_v18 }
 0x6a2   : >> { %v931_v61 = vpop.permute.xlu2 %930 }
 0x6a3   : >> { %v933_v60 = vadd.f32 %v931_v61, %v926_v63  ;;  %v934_v62 = vadd.f32 %v931_v61, %v927_v59 }
 0x6a5   : >> { %v935_v43 = vmax.f32 %v933_v60, 0.0  ;;  %v936_v35 = vmax.f32 %v934_v62, 0.0 }
 0x6a7   : >> { %v938_v4 = vpack.c.bf16 %v936_v35, %v936_v35  ;;  %v937_v58 = vpack.c.bf16 %v935_v43, %v935_v43 }
 0x6a9   : >> { %v956_v5 = vsel %vm798_vm8, %v937_v58, 0  ;;  %v959_v45 = vsel %vm798_vm8, %v938_v4, 0 }
 0x6aa   : >> { %968 = vmatpush.bf16.msrb.mxu1 %v956_v5  ;;  %987 = vmatpush.bf16.msrb.mxu0 %v959_v45 }
 0x6ab   : >> { %1406 = vmatpush.bf16.msra.mxu3 %v959_v45 }
 0x6ad   : >> { %1383 = vmatmul.msk.bf16.vlgmr.msrb.gmra.mxu1 %vm558_vm2, %v1378_v39  ;;  %1385 = vmatmul.msk.bf16.vlgmr.msrb.gmra.mxu0 %vm558_vm2, %v1378_v39 }
 0x6ae   : >> { %1386 = vmatmul.msk.bf16.vlgmr.msra.gmra.mxu3 %vm558_vm2, %v1382_v2 }
 0x6bd   : >> { %1384 = vmatmul.msk.bf16.gmra.mxu1 %vm558_vm2, %v1382_v2 }
 0x72a   : >> { %v2067_v55 = vpop.f32.mrf.mxu1  ;;  %v2071_v42 = vpop.f32.mrf.mxu0 }
 0x72b   : >> { %v999_v44 = vadd.f32 %v2071_v42, %v2067_v55  ;;  %v1011_v61 = vmul.f32 %v2067_v55, %v2067_v55  ;;  %v1012_v60 = vmul.f32 %v2071_v42, %v2071_v42 }
 0x72d   : >> { %v1019_v62 = vadd.f32 %v1012_v60, %v1011_v61 }
 0x731   : >> { %v2073_v0 = vpop.f32.mrf.mxu3 }
 0x732   : >> { %v2069_v7 = vpop.f32.mrf.mxu1  ;;  %v1016_v3 = vmul.f32 %v2073_v0, %v2073_v0  ;;  %v2083_v47 = vpop.f32.mrf.mxu0 }
 0x733   : >> { %v1014_v54 = vmul.f32 %v2083_v47, %v2083_v47  ;;  %v1013_v48 = vmul.f32 %v2069_v7, %v2069_v7  ;;  %v1002_v51 = vadd.f32 %v2083_v47, %v2069_v7 }
 0x735   : >> { %v1022_v8 = vadd.f32 %v1014_v54, %v1013_v48 }
 0x739   : >> { %v2089_v49 = vpop.f32.mrf.mxu3 }
 0x73a   : >> { %v2077_v6 = vpop.f32.mrf.mxu1  ;;  %v1018_v63 = vmul.f32 %v2089_v49, %v2089_v49 }
 0x73b   : >> { %v1005_v52 = vadd.f32 %v2073_v0, %v2077_v6  ;;  %v1015_v46 = vmul.f32 %v2077_v6, %v2077_v6 }
 0x73d   : >> { %1006 = vadd.xlane.f32.xlu1 %v1005_v52  ;;  %v1025_v56 = vadd.f32 %v1016_v3, %v1015_v46 }
 0x73f   : >> { %1026 = vadd.xlane.f32.xlu0 %v1025_v56 }
 0x742   : >> { %v2091_v50 = vpop.f32.mrf.mxu1 }
 0x743   : >> { %v1008_v53 = vadd.f32 %v2089_v49, %v2091_v50  ;;  %v1017_v57 = vmul.f32 %v2091_v50, %v2091_v50 }
 0x745   : >> { %1003 = vadd.xlane.f32.xlu1 %v1002_v51  ;;  %1009 = vadd.xlane.f32.xlu2 %v1008_v53  ;;  %v1028_v59 = vadd.f32 %v1018_v63, %v1017_v57 }
 0x747   : >> { %1023 = vadd.xlane.f32.xlu0 %v1022_v8 }
 0x74d   : >> { %1000 = vadd.xlane.f32.xlu1 %v999_v44 }
 0x74f   : >> { %1029 = vadd.xlane.f32.xlu0 %v1028_v59 }
 0x757   : >> { %1020 = vadd.xlane.f32.xlu0 %v1019_v62 }
 0x7b0   : >> { %v1007_v35 = vpop.xlane.xlu1 %1006 }
 0x7b2   : >> { %v1027_v43 = vpop.xlane.xlu0 %1026 }
 0x7b3   : >> { %v1033_v2 = vsel %vm556_vm1, %v1007_v35, %v1027_v43 }
 0x7b8   : >> { %v1004_v58 = vpop.xlane.xlu1 %1003  ;;  %v1010_v5 = vpop.xlane.xlu2 %1009 }
 0x7ba   : >> { %v1024_v4 = vpop.xlane.xlu0 %1023 }
 0x7bb   : >> { %v1032_v3 = vsel %vm556_vm1, %v1004_v58, %v1024_v4 }
 0x7c0   : >> { %v1001_v52 = vpop.xlane.xlu1 %1000 }
 0x7c2   : >> { %v1030_v45 = vpop.xlane.xlu0 %1029 }
 0x7c3   : >> { %v1034_v39 = vsel %vm556_vm1, %v1010_v5, %v1030_v45 }
 0x7c4   : >> { %1059 = vmatpush.msrb.mxu3 %v1034_v39 }
 0x7c6   : >> { %1060 = vmatpush.msrb.mxu3 %v1033_v2 }
 0x7c8   : >> { %1061 = vmatpush.msrb.mxu3 %v1032_v3 }
 0x7ca   : >> { %v1021_v46 = vpop.xlane.xlu0 %1020 }
 0x7cb   : >> { %v1031_v56 = vsel %vm556_vm1, %v1001_v52, %v1021_v46 }
 0x7cc   : >> { %1062 = vmatpush.msrb.mxu3 %v1031_v56 }
 0x7cd   : >> { %1387 = vmatmul.msk.f32.vlgmr.msrb.gmra.mxu3 %vm518_vm0, %v1829_v10 }
 0x7d5   : >> { %1388 = vmatmul.msk.f32.gmra.mxu3 %vm518_vm0, %v1834_v11 }
 0x7dd   : >> { %1389 = vmatmul.msk.f32.gmra.mxu3 %vm518_vm0, %v1839_v12 }
 0x7e5   : >> { %1390 = vmatmul.msk.f32.gmra.mxu3 %vm518_vm0, %v1844_v13 }
 0x850   : >> { %v2119_v54 = vpop.f32.mrf.mxu3 }
 0x851   : >> { %v1076_v48 = vmul.f32 %v2119_v54, %v2119_v54 }
 0x853   : >> { %1084 = vrot.lane.b32.xlu1 %v1076_v48, %s1597_s20 }
 0x858   : >> { %v2124_v51 = vpop.f32.mrf.mxu3 }
 0x859   : >> { %v1077_v53 = vmul.f32 %v2124_v51, %v2124_v51 }
 0x85b   : >> { %1086 = vrot.lane.b32.xlu0 %v1077_v53, %s1597_s20 }
 0x860   : >> { %v2129_v8 = vpop.f32.mrf.mxu3 }
 0x861   : >> { %v1078_v57 = vmul.f32 %v2129_v8, %v2129_v8 }
 0x863   : >> { %1088 = vrot.lane.b32.xlu2 %v1078_v57, %s1597_s20 }
 0x868   : >> { %v2134_v44 = vpop.f32.mrf.mxu3 }
 0x869   : >> { %v1079_v63 = vmul.f32 %v2134_v44, %v2134_v44 }
 0x86b   : >> { %1090 = vrot.lane.b32.xlu0 %v1079_v63, %s1597_s20 }
 0x8bd   : >> { %v1089_v59 = vpop.permute.xlu2 %1088 }
 0x8be   : >> { %v1098_v61 = vsub.f32 %v2129_v8, %v1089_v59 }
 0x8c0   : >> { %v1102_v60 = vmax.f32 %v1098_v61, 0.0 }
 0x8c2   : >> { %v1106_v62 = vadd.f32 1e-05, %v1102_v60 }
 0x8c4   : >> { %1481 = vrsqrt.f32 %v1106_v62  ;;  %vm1134_vm1 = vweird.f32 %v1106_v62 }
 0x8c5   : >> { %v1085_v43 = vpop.permute.xlu1 %1084 }
 0x8c6   : >> { %v1096_v35 = vsub.f32 %v2119_v54, %v1085_v43 }
 0x8c8   : >> { %v1100_v4 = vmax.f32 %v1096_v35, 0.0 }
 0x8ca   : >> { %v1482_v58 = vpop.eup %1481  ;;  %v1104_v5 = vadd.f32 1e-05, %v1100_v4 }
 0x8cb   : >> { %v1129_v45 = vmul.f32 %v1482_v58, %v1106_v62  ;;  %vm1135_vm0 = vweird.f32 %v1482_v58 }
 0x8cc   : >> { %1483 = vrsqrt.f32 %v1104_v5  ;;  %vm1136_vm2 = vmor %vm1134_vm1, %vm1135_vm0  ;;  %vm1114_vm7 = vweird.f32 %v1104_v5 }
 0x8cd   : >> { %v1130_v39 = vmul.f32 %v1482_v58, %v1129_v45  ;;  %v1087_v2 = vpop.permute.xlu0 %1086 }
 0x8ce   : >> { %v1097_v3 = vsub.f32 %v2124_v51, %v1087_v2 }
 0x8cf   : >> { %v1131_v52 = vmul.f32 0.5, %v1130_v39 }
 0x8d0   : >> { %v1101_v46 = vmax.f32 %v1097_v3, 0.0 }
 0x8d1   : >> { %v1132_v56 = vsub.f32 1.5, %v1131_v52 }
 0x8d2   : >> { %v1484_v48 = vpop.eup %1483  ;;  %v1105_v53 = vadd.f32 1e-05, %v1101_v46 }
 0x8d3   : >> { %v1109_v57 = vmul.f32 %v1484_v48, %v1104_v5  ;;  %v1133_v63 = vmul.f32 %v1482_v58, %v1132_v56  ;;  %vm1115_vm6 = vweird.f32 %v1484_v48 }
 0x8d4   : >> { %1485 = vrsqrt.f32 %v1105_v53  ;;  %vm1116_vm8 = vmor %vm1114_vm7, %vm1115_vm6  ;;  %vm1124_vm10 = vweird.f32 %v1105_v53 }
 0x8d5   : >> { %v1110_v59 = vmul.f32 %v1484_v48, %v1109_v57  ;;  %v1137_v61 = vsel %vm1136_vm2, %v1482_v58, %v1133_v63 }
 0x8d6   : >> { %1156 = vrot.lane.b32.xlu0 %v1137_v61, %s1598_s19 }
 0x8d7   : >> { %v1111_v60 = vmul.f32 0.5, %v1110_v59 }
 0x8d9   : >> { %v1112_v43 = vsub.f32 1.5, %v1111_v60 }
 0x8da   : >> { %v1486_v35 = vpop.eup %1485 }
 0x8db   : >> { %v1119_v4 = vmul.f32 %v1486_v35, %v1105_v53  ;;  %v1113_v45 = vmul.f32 %v1484_v48, %v1112_v43  ;;  %vm1125_vm9 = vweird.f32 %v1486_v35 }
 0x8dc   : >> { %vm1126_vm11 = vmor %vm1124_vm10, %vm1125_vm9 }
 0x8dd   : >> { %v1120_v39 = vmul.f32 %v1486_v35, %v1119_v4  ;;  %v1091_v2 = vpop.permute.xlu0 %1090  ;;  %v1117_v3 = vsel %vm1116_vm8, %v1484_v48, %v1113_v45 }
 0x8de   : >> { %v1099_v52 = vsub.f32 %v2134_v44, %v1091_v2  ;;  %1152 = vrot.lane.b32.xlu1 %v1117_v3, %s1598_s19 }
 0x8df   : >> { %v1121_v62 = vmul.f32 0.5, %v1120_v39 }
 0x8e0   : >> { %v1103_v46 = vmax.f32 %v1099_v52, 0.0 }
 0x8e1   : >> { %v1122_v58 = vsub.f32 1.5, %v1121_v62 }
 0x8e2   : >> { %v1107_v56 = vadd.f32 1e-05, %v1103_v46 }
 0x8e3   : >> { %v1123_v57 = vmul.f32 %v1486_v35, %v1122_v58 }
 0x8e4   : >> { %1487 = vrsqrt.f32 %v1107_v56  ;;  %vm1144_vm13 = vweird.f32 %v1107_v56 }
 0x8e5   : >> { %v1127_v63 = vsel %vm1126_vm11, %v1486_v35, %v1123_v57 }
 0x8e6   : >> { %1154 = vrot.lane.b32.xlu2 %v1127_v63, %s1598_s19 }
 0x8ea   : >> { %v1488_v5 = vpop.eup %1487 }
 0x8eb   : >> { %v1139_v59 = vmul.f32 %v1488_v5, %v1107_v56  ;;  %vm1145_vm12 = vweird.f32 %v1488_v5 }
 0x8ec   : >> { %vm1146_vm14 = vmor %vm1144_vm13, %vm1145_vm12 }
 0x8ed   : >> { %v1140_v61 = vmul.f32 %v1488_v5, %v1139_v59 }
 0x8ef   : >> { %v1141_v48 = vmul.f32 0.5, %v1140_v61 }
 0x8f1   : >> { %v1142_v60 = vsub.f32 1.5, %v1141_v48 }
 0x8f3   : >> { %v1143_v43 = vmul.f32 %v1488_v5, %v1142_v60 }
 0x8f5   : >> { %v1147_v4 = vsel %vm1146_vm14, %v1488_v5, %v1143_v43 }
 0x8f6   : >> { %1158 = vrot.lane.b32.xlu1 %v1147_v4, %s1598_s19 }
 0x940   : >> { %v1155_v45 = vpop.permute.xlu2 %1154 }
 0x941   : >> { %v1165_v53 = vmul.f32 %v1155_v45, %v1904_v25 }
 0x943   : >> { %1183 = vperm.xlu0 %1476, %v1165_v53  }
 0x948   : >> { %v1157_v39 = vpop.permute.xlu0 %1156 }
 0x949   : >> { %v1166_v35 = vmul.f32 %v1157_v39, %v1909_v26 }
 0x94b   : >> { %v1170_v2 = vmul.f32 %v1166_v35, %v2129_v8  ;;  %v1169_v8 = vmul.f32 %v1165_v53, %v2124_v51 }
 0x94d   : >> { %v1174_v3 = vsub.f32 %v1929_v30, %v1170_v2 }
 0x94f   : >> { %1216 = vperm.xlu0 %1476, %v1174_v3  }
 0x950   : >> { %v1153_v52 = vpop.permute.xlu1 %1152 }
 0x951   : >> { %v1164_v62 = vmul.f32 %v1153_v52, %v1899_v24 }
 0x953   : >> { %v1168_v46 = vmul.f32 %v1164_v62, %v2119_v54  ;;  %1178 = vperm.xlu2 %1474, %v1164_v62   ;;  %v1173_v54 = vsub.f32 %v1924_v29, %v1169_v8 }
 0x955   : >> { %v1172_v58 = vsub.f32 %v1919_v28, %v1168_v46 }
 0x957   : >> { %1206 = vperm.xlu1 %1475, %v1172_v58  }
 0x95f   : >> { %1188 = vperm.xlu1 %1475, %v1166_v35  }
 0x968   : >> { %v1159_v56 = vpop.permute.xlu1 %1158 }
 0x969   : >> { %v1167_v57 = vmul.f32 %v1159_v56, %v1914_v27 }
 0x96b   : >> { %v1171_v63 = vmul.f32 %v1167_v57, %v2134_v44  ;;  %1193 = vperm.xlu2 %1474, %v1167_v57  }
 0x96d   : >> { %v1175_v5 = vsub.f32 %v1934_v31, %v1171_v63 }
 0x96f   : >> { %1221 = vperm.xlu1 %1475, %v1175_v5  }
 0x973   : >> { %1211 = vperm.xlu2 %1474, %v1173_v54  }
 0x9ad   : >> { %v1179_v59 = vpop.permute.xlu2 %1178 }
 0x9ae   : >> { %v1196_v48 = vmul.f32 %v1179_v59, %v2067_v55  ;;  %v1197_v60 = vmul.f32 %v1179_v59, %v2071_v42 }
 0x9b5   : >> { %v1184_v43 = vpop.permute.xlu0 %1183 }
 0x9b6   : >> { %v1198_v51 = vmul.f32 %v1184_v43, %v2069_v7  ;;  %v1199_v53 = vmul.f32 %v1184_v43, %v2083_v47 }
 0x9c1   : >> { %v1217_v56 = vpop.permute.xlu0 %1216 }
 0x9c5   : >> { %v1194_v61 = vpop.permute.xlu2 %1193 }
 0x9c6   : >> { %v1202_v54 = vmul.f32 %v1194_v61, %v2091_v50 }
 0x9c9   : >> { %v1207_v4 = vpop.permute.xlu1 %1206 }
 0x9ca   : >> { %v1224_v44 = vadd.f32 %v1207_v4, %v1196_v48  ;;  %v1225_v45 = vadd.f32 %v1207_v4, %v1197_v60 }
 0x9cc   : >> { %v1232_v39 = vadd.f32 %v1224_v44, %v1959_v37  ;;  %v1233_v35 = vadd.f32 %v1225_v45, %v1965_v40 }
 0x9cd   : >> { %v1212_v55 = vpop.permute.xlu2 %1211 }
 0x9ce   : >> { %v1240_v42 = vmax.f32 %v1232_v39, 0.0  ;;  %v1241_v2 = vmax.f32 %v1233_v35, 0.0  ;;  %v1226_v3 = vadd.f32 %v1212_v55, %v1198_v51  ;;  %v1227_v52 = vadd.f32 %v1212_v55, %v1199_v53 }
 0x9d0   : >> { %1250 = vst [vmem:[%s2168_s14] sm:$0xff] %v1240_v42  ;;  %v1234_v7 = vadd.f32 %v1226_v3, %v1961_v38  ;;  %v1235_v47 = vadd.f32 %v1227_v52, %v1967_v41 }
 0x9d1   : >> { %1251 = vst [vmem:[%s2168_s14 + $0x8] sm:$0xff] %v1241_v2  ;;  %v1189_v37 = vpop.permute.xlu1 %1188 }
 0x9d2   : >> { %v1242_v40 = vmax.f32 %v1234_v7, 0.0  ;;  %v1243_v62 = vmax.f32 %v1235_v47, 0.0  ;;  %v1200_v46 = vmul.f32 %v1189_v37, %v2077_v6  ;;  %v1201_v58 = vmul.f32 %v1189_v37, %v2073_v0 }
 0x9d3   : >> { %v1203_v6 = vmul.f32 %v1194_v61, %v2089_v49 }
 0x9d4   : >> { %1252 = vst [vmem:[%s2168_s14 + $0x10] sm:$0xff] %v1242_v40  ;;  %v1228_v57 = vadd.f32 %v1217_v56, %v1200_v46  ;;  %v1229_v63 = vadd.f32 %v1217_v56, %v1201_v58 }
 0x9d5   : >> { %1253 = vst [vmem:[%s2168_s14 + $0x18] sm:$0xff] %v1243_v62 }
 0x9d6   : >> { %v1236_v38 = vadd.f32 %v1228_v57, %v1949_v32  ;;  %v1237_v41 = vadd.f32 %v1229_v63, %v1953_v34 }
 0x9d8   : >> { %v1244_v8 = vmax.f32 %v1236_v38, 0.0  ;;  %v1245_v5 = vmax.f32 %v1237_v41, 0.0 }
 0x9da   : >> { %1254 = vst [vmem:[%s2168_s14 + $0x20] sm:$0xff] %v1244_v8 }
 0x9db   : >> { %1255 = vst [vmem:[%s2168_s14 + $0x28] sm:$0xff] %v1245_v5 }
 0x9e1   : >> { %v1222_v0 = vpop.permute.xlu1 %1221 }
 0x9e2   : >> { %v1230_v59 = vadd.f32 %v1222_v0, %v1202_v54  ;;  %v1231_v48 = vadd.f32 %v1222_v0, %v1203_v6 }
 0x9e4   : >> { %v1238_v60 = vadd.f32 %v1230_v59, %v1951_v33  ;;  %v1239_v43 = vadd.f32 %v1231_v48, %v1957_v36 }
 0x9e5   : > { %501 = sbr.rel (!%p499_p6) target bundleno = 68 (0x44), region = 126 }
 0x9e6   : >> { %v1246_v4 = vmax.f32 %v1238_v60, 0.0  ;;  %v1247_v32 = vmax.f32 %v1239_v43, 0.0 }
 0x9e8   : >> { %1256 = vst [vmem:[%s2168_s14 + $0x30] sm:$0xff] %v1246_v4 }
 0x9e9   : >> { %1257 = vst [vmem:[%s2168_s14 + $0x38] sm:$0xff] %v1247_v32  ;;  %s1535_s14 = scalar_lea.hbm (%p499_p6), %s1534_s27, 256 }
 0x9ea   : > { %p1536_p9 = scmp.ne.s32.totalorder %s1534_s27, %s1535_s14  ;;  %p1541_p3 = scmp.lt.s32.totalorder %s1539_s29, %s1535_s14 }
 0x9ec   : > { %p1537_p13 = pnand %p1536_p9, %p1728_p11  ;;  %p1542_p4 = por %p1541_p3, %p1540_p1 }
 0x9ee   : > { %p1538_p0 = pneg %p1537_p13 }
 0x9f0   : > { %p1543_p7 = pnand %p1542_p4, %p1538_p0 }
 0x9f2   : > { %1546 = shalt.err (!%p1543_p7)
}
 0x9f3   : > { %s1606_s30 = smov 256   ;;  %s1607_s23 = smov 16  }
 0x9f4   : > { %1409 = dma.vmem_to_hbm [thread:$0]  (%p1728_p11), %s1273_s21, 4096, %s1275_s13, %s1259_s25, %s1606_s30, %s1606_s30, %s1607_s23  }
 0x9f5 PF: > { %s2289_s15 = sld [smem:[#allocation8_spill]]  ;;  %p2291_p5 = scmp.ge.s32.totalorder %s1589_s28, 2 }
 0x9f7   : > { %p1416_p8 = pnand %p2291_p5, %p1732_p12 }
 0x9f9   : > { %p1417_p10 = pneg %p1416_p8 }
 0x9fb   : > { %s1289_s19 = sand.u32 1, %s2289_s15  }
 0x9fc   : > { %s1290_s0 = scalar_lea.sflag [#allocation4], %s1289_s19 }
 0x9fd   : > { %1572 = dma.done.wait (%p1417_p10), %s1290_s0, 4096  }
 0x9fe   : > { %1574 = vsyncadd (%p1417_p10), %s1290_s0, 4294963200  ;;  %s2292_s28 = sld [smem:[#allocation10_spill]]  ;;  %s2295_s25 = smov %s1581_s26 }
 0x9ff   : > { %s2293_s1 = sld [smem:[#allocation9_spill]] }
 0xa00   : > { %s2294_s27 = sld [smem:[#allocation11_spill]] }
 0xa04   : > { %p26_p2 = scmp.ge.s32.totalorder %s2292_s28, 4  }
 0xa05   : > { %s2296_s26 = smov %s2293_s1 }
 0xa06   :  { %28 = sbr.rel (!%p26_p2) target bundleno = 9 (0x9), region = 137 }
 0xa0b   :  { %1296 = vsyncpa [#allocation3], 1 }
 0xa0c   :  { %1298 = vsyncpa [#allocation3 + $0x1], 1 }
 0xa0d   :  { %1299 = vsyncpa [#allocation4], 1 }
 0xa0e   :  { %1301 = vsyncpa [#allocation4 + $0x1], 1 }

</bundles_post_ra>
